<compile_context>
chip_gen: v7x
topology: tpu7x:2x2x1
jax: 0.10.0
libtpu: 0.0.40
codegen_flags: <defaults>
</compile_context>

<pallas_src>
import functools

import jax
import jax.numpy as jnp
from jax import lax
from jax.experimental import pallas as pl
from jax.experimental.pallas import tpu as pltpu

TSK_DIM = 32
IN_DIM = 1024 + TSK_DIM      # 1056, hard-coded by the module
IN_DIM_PAD = 1152            # 9 * 128 — lane-aligned contraction dim for the first matmul
HIDDEN = 32                  # hidden_channels
HIDDEN_PAD = 128
C2 = 128                     # conv2 out (already lane-dense)
C3 = 64                      # conv3 out
C3_PAD = 128
NUM_CLASSES = 3
OUT_PAD = 128


# ----------------------------- Pallas kernel ------------------------------- #
def gcn_fused_kernel(a_ref, p_ref, x_ref,
                     w1_ref, b1_ref, w2_ref, b2_ref, w3_ref, b3_ref,
                     wl_ref, bl_ref, o_ref):
    """out = ((P @ conv3(conv2(conv1(x)))) @ W_lin + b_lin), convK(h) = act(A @ (h @ Wk) + bk).

    A, P, x, W* are bf16 MXU operands; all accumulation is f32.  Everything stays in VMEM.
    """
    a = a_ref[...]                                                     # [N, N] bf16

    # conv1 + relu
    xw = jnp.dot(x_ref[...], w1_ref[...], preferred_element_type=jnp.float32)
    h = jnp.dot(a, xw.astype(jnp.bfloat16),
                preferred_element_type=jnp.float32) + b1_ref[...]
    h = jnp.maximum(h, 0.0)

    # conv2 + relu
    hw = jnp.dot(h.astype(jnp.bfloat16), w2_ref[...], preferred_element_type=jnp.float32)
    h = jnp.dot(a, hw.astype(jnp.bfloat16),
                preferred_element_type=jnp.float32) + b2_ref[...]
    h = jnp.maximum(h, 0.0)

    # conv3 (no relu)
    hw = jnp.dot(h.astype(jnp.bfloat16), w3_ref[...], preferred_element_type=jnp.float32)
    h = jnp.dot(a, hw.astype(jnp.bfloat16),
                preferred_element_type=jnp.float32) + b3_ref[...]

    # global_mean_pool (P is the per-graph mean matrix) ; dropout(p=0.5) == identity at inference
    pooled = jnp.dot(p_ref[...], h.astype(jnp.bfloat16), preferred_element_type=jnp.float32)

    # final Linear
    out = jnp.dot(pooled.astype(jnp.bfloat16), wl_ref[...],
                  preferred_element_type=jnp.float32) + bl_ref[...]
    o_ref[...] = out


def gcn_fused(a_bf16, p_bf16, x_pad_bf16, params, num_graphs):
    vspec = pl.BlockSpec(memory_space=pltpu.MemorySpace.VMEM)
    out = pl.pallas_call(
        gcn_fused_kernel,
        out_shape=jax.ShapeDtypeStruct((num_graphs, OUT_PAD), jnp.float32),
        in_specs=[vspec] * 11,
        out_specs=vspec,
        compiler_params=pltpu.CompilerParams(vmem_limit_bytes=32 * 1024 * 1024),
    )(a_bf16, p_bf16, x_pad_bf16,
      params["w1"], params["b1"],
      params["w2"], params["b2"],
      params["w3"], params["b3"],
      params["w_lin"], params["b_lin"])
    return out[:, :NUM_CLASSES]   # strip lane padding


# ------------------------------ JAX glue ------------------------------------ #
def build_norm_adj(edge_index, edge_weight, num_nodes):
    """PyG GCNConv gcn_norm: add self-loops (w=1), A_hat = D^-1/2 (A+I) D^-1/2 (dense)."""
    src, dst = edge_index[0], edge_index[1]
    loop = jnp.arange(num_nodes, dtype=src.dtype)
    src = jnp.concatenate([src, loop])
    dst = jnp.concatenate([dst, loop])
    w = jnp.concatenate([edge_weight.astype(jnp.float32),
                         jnp.ones((num_nodes,), jnp.float32)])
    deg = jnp.zeros((num_nodes,), jnp.float32).at[dst].add(w)
    dinv = jnp.where(deg > 0, lax.rsqrt(deg), 0.0)
    norm = dinv[src] * w * dinv[dst]
    # message flows src -> dst, aggregated at dst:  A_hat[dst, src] = norm
    A = jnp.zeros((num_nodes, num_nodes), jnp.float32).at[dst, src].add(norm)
    return A


def mean_pool_matrix(batch, num_graphs):
    onehot = (batch[None, :] == jnp.arange(num_graphs)[:, None]).astype(jnp.float32)
    counts = jnp.maximum(onehot.sum(axis=1, keepdims=True), 1.0)
    return onehot / counts


def glorot(key, shape):
    fan_in, fan_out = shape
    limit = jnp.sqrt(6.0 / (fan_in + fan_out))
    return jax.random.uniform(key, shape, jnp.float32, -limit, limit)


def _pad2(w, rows, cols):
    return jnp.zeros((rows, cols), w.dtype).at[:w.shape[0], :w.shape[1]].set(w)


def init_params_padded(key):
    """Init (glorot) and zero-pad every weight/bias to lane-dense (multiple-of-128) shapes once.

    Zero padding is mathematically inert: padded input columns hit zero weight rows, padded
    output columns get zero weights + zero bias, so the un-padded slice matches the original.
    """
    ks = jax.random.split(key, 8)
    w1 = glorot(ks[0], (IN_DIM, HIDDEN))
    w2 = glorot(ks[1], (HIDDEN, C2))
    w3 = glorot(ks[2], (C2, C3))
    wl = glorot(ks[3], (C3, NUM_CLASSES))
    bl = jax.random.uniform(ks[4], (NUM_CLASSES,), jnp.float32, -0.125, 0.125)
    return {
        "w1": _pad2(w1, IN_DIM_PAD, HIDDEN_PAD).astype(jnp.bfloat16),
        "b1": jnp.zeros((1, HIDDEN_PAD), jnp.float32),
        "w2": _pad2(w2, HIDDEN_PAD, C2).astype(jnp.bfloat16),
        "b2": jnp.zeros((1, C2), jnp.float32),
        "w3": _pad2(w3, C2, C3_PAD).astype(jnp.bfloat16),
        "b3": jnp.zeros((1, C3_PAD), jnp.float32),
        "w_lin": _pad2(wl, C3_PAD, OUT_PAD).astype(jnp.bfloat16),
        "b_lin": jnp.zeros((1, OUT_PAD), jnp.float32).at[0, :NUM_CLASSES].set(bl),
    }


def gcn_forward(params, x, edge_index, edge_weight, batch, num_graphs):
    num_nodes = x.shape[0]
    A = build_norm_adj(edge_index, edge_weight, num_nodes).astype(jnp.bfloat16)
    P = mean_pool_matrix(batch, num_graphs).astype(jnp.bfloat16)
    x_pad = jnp.zeros((num_nodes, IN_DIM_PAD), jnp.bfloat16).at[:, :IN_DIM].set(
        x.astype(jnp.bfloat16))
    return gcn_fused(A, P, x_pad, params, num_graphs)


# -------------------------------- main -------------------------------------- #
if __name__ == "__main__":
    key = jax.random.PRNGKey(0)
    k_param, k_x, k_w = jax.random.split(key, 3)

    NODES_PER_GRAPH = 8
    NUM_GRAPHS = 16                       # batch of graphs -> 128 node rows fills MXU sublanes
    NUM_NODES = NODES_PER_GRAPH * NUM_GRAPHS   # 128

    # node features
    x = jax.random.normal(k_x, (NUM_NODES, IN_DIM), jnp.float32)

    # bidirectional ring graph inside each of the graphs (16 directed edges per graph)
    src_list, dst_list = [], []
    for g in range(NUM_GRAPHS):
        base = g * NODES_PER_GRAPH
        for i in range(NODES_PER_GRAPH):
            a = base + i
            b = base + (i + 1) % NODES_PER_GRAPH
            src_list += [a, b]
            dst_list += [b, a]
    edge_index = jnp.array([src_list, dst_list], dtype=jnp.int32)            # (2, 256)
    edge_weight = jax.random.uniform(k_w, (edge_index.shape[1],), jnp.float32,
                                     0.5, 1.5)                               # (256,)
    batch = jnp.repeat(jnp.arange(NUM_GRAPHS, dtype=jnp.int32),
                       NODES_PER_GRAPH)                                      # (128,)

    params = init_params_padded(k_param)

    fwd = jax.jit(functools.partial(gcn_forward, num_graphs=NUM_GRAPHS))
    out = fwd(params, x, edge_index, edge_weight, batch)
    jax.block_until_ready(out)
    assert out.shape == (NUM_GRAPHS, NUM_CLASSES)
    assert bool(jnp.all(jnp.isfinite(out)))
    print("KERNEL_OK")
</pallas_src>

<mosaic_0001>
module attributes {stable_mosaic.version = 11 : i64} {
  func.func private @main(%arg0: i32) attributes {dimension_semantics = [#tpu.dimension_semantics<core_parallel>], iteration_bounds = array<i64: 2>, tpu.core_type = #tpu.core_type<sc_scalar_subcore>, window_params = []} {
    return
  }
}

module attributes {stable_mosaic.version = 11 : i64} {
  func.func private @main(%arg0: i32) attributes {dimension_semantics = [#tpu.dimension_semantics<core_parallel>], iteration_bounds = array<i64: 2>, tpu.core_type = #tpu.core_type<sc_scalar_subcore>, window_params = []} {
    return
  }
}

module attributes {stable_mosaic.version = 11 : i64} {
  func.func @gcn_fused_kernel(%arg0: memref<128x128xbf16, #tpu.memory_space<vmem>>, %arg1: memref<16x128xbf16, #tpu.memory_space<vmem>>, %arg2: memref<128x1152xbf16, #tpu.memory_space<vmem>>, %arg3: memref<1152x128xbf16, #tpu.memory_space<vmem>>, %arg4: memref<1x128xf32, #tpu.memory_space<vmem>>, %arg5: memref<128x128xbf16, #tpu.memory_space<vmem>>, %arg6: memref<1x128xf32, #tpu.memory_space<vmem>>, %arg7: memref<128x128xbf16, #tpu.memory_space<vmem>>, %arg8: memref<1x128xf32, #tpu.memory_space<vmem>>, %arg9: memref<128x128xbf16, #tpu.memory_space<vmem>>, %arg10: memref<1x128xf32, #tpu.memory_space<vmem>>, %arg11: memref<16x128xf32, #tpu.memory_space<vmem>>) attributes {dimension_semantics = [], scalar_prefetch = 0 : i64, scratch_operands = 0 : i64, tpu.core_type = #tpu.core_type<tc>} {
    %c0 = arith.constant 0 : index
    %c0_0 = arith.constant 0 : index
    %0 = vector.load %arg0[%c0, %c0_0] : memref<128x128xbf16, #tpu.memory_space<vmem>>, vector<128x128xbf16>
    %c0_1 = arith.constant 0 : index
    %c0_2 = arith.constant 0 : index
    %1 = vector.load %arg2[%c0_1, %c0_2] : memref<128x1152xbf16, #tpu.memory_space<vmem>>, vector<128x1152xbf16>
    %c0_3 = arith.constant 0 : index
    %c0_4 = arith.constant 0 : index
    %2 = vector.load %arg3[%c0_3, %c0_4] : memref<1152x128xbf16, #tpu.memory_space<vmem>>, vector<1152x128xbf16>
    %cst = arith.constant dense<0.000000e+00> : vector<128x128xf32>
    %3 = tpu.matmul %1, %2, %cst {dimension_numbers = #tpu.dot_dimension_numbers<[1], [0], [0], [1], [0, 0, 1, 1], [], []>} : vector<128x1152xbf16>, vector<1152x128xbf16>, vector<128x128xf32> -> vector<128x128xf32>
    %4 = arith.truncf %3 : vector<128x128xf32> to vector<128x128xbf16>
    %cst_5 = arith.constant dense<0.000000e+00> : vector<128x128xf32>
    %5 = tpu.matmul %0, %4, %cst_5 {dimension_numbers = #tpu.dot_dimension_numbers<[1], [0], [0], [1], [0, 0, 1, 1], [], []>} : vector<128x128xbf16>, vector<128x128xbf16>, vector<128x128xf32> -> vector<128x128xf32>
    %c0_6 = arith.constant 0 : index
    %c0_7 = arith.constant 0 : index
    %6 = vector.load %arg4[%c0_6, %c0_7] : memref<1x128xf32, #tpu.memory_space<vmem>>, vector<1x128xf32>
    %7 = vector.broadcast %6 : vector<1x128xf32> to vector<128x128xf32>
    %8 = arith.addf %5, %7 : vector<128x128xf32>
    %cst_8 = arith.constant 0.000000e+00 : f32
    %9 = vector.broadcast %cst_8 : f32 to vector<128x128xf32>
    %10 = arith.maximumf %8, %9 : vector<128x128xf32>
    %11 = arith.truncf %10 : vector<128x128xf32> to vector<128x128xbf16>
    %c0_9 = arith.constant 0 : index
    %c0_10 = arith.constant 0 : index
    %12 = vector.load %arg5[%c0_9, %c0_10] : memref<128x128xbf16, #tpu.memory_space<vmem>>, vector<128x128xbf16>
    %cst_11 = arith.constant dense<0.000000e+00> : vector<128x128xf32>
    %13 = tpu.matmul %11, %12, %cst_11 {dimension_numbers = #tpu.dot_dimension_numbers<[1], [0], [0], [1], [0, 0, 1, 1], [], []>} : vector<128x128xbf16>, vector<128x128xbf16>, vector<128x128xf32> -> vector<128x128xf32>
    %14 = arith.truncf %13 : vector<128x128xf32> to vector<128x128xbf16>
    %cst_12 = arith.constant dense<0.000000e+00> : vector<128x128xf32>
    %15 = tpu.matmul %0, %14, %cst_12 {dimension_numbers = #tpu.dot_dimension_numbers<[1], [0], [0], [1], [0, 0, 1, 1], [], []>} : vector<128x128xbf16>, vector<128x128xbf16>, vector<128x128xf32> -> vector<128x128xf32>
    %c0_13 = arith.constant 0 : index
    %c0_14 = arith.constant 0 : index
    %16 = vector.load %arg6[%c0_13, %c0_14] : memref<1x128xf32, #tpu.memory_space<vmem>>, vector<1x128xf32>
    %17 = vector.broadcast %16 : vector<1x128xf32> to vector<128x128xf32>
    %18 = arith.addf %15, %17 : vector<128x128xf32>
    %cst_15 = arith.constant 0.000000e+00 : f32
    %19 = vector.broadcast %cst_15 : f32 to vector<128x128xf32>
    %20 = arith.maximumf %18, %19 : vector<128x128xf32>
    %21 = arith.truncf %20 : vector<128x128xf32> to vector<128x128xbf16>
    %c0_16 = arith.constant 0 : index
    %c0_17 = arith.constant 0 : index
    %22 = vector.load %arg7[%c0_16, %c0_17] : memref<128x128xbf16, #tpu.memory_space<vmem>>, vector<128x128xbf16>
    %cst_18 = arith.constant dense<0.000000e+00> : vector<128x128xf32>
    %23 = tpu.matmul %21, %22, %cst_18 {dimension_numbers = #tpu.dot_dimension_numbers<[1], [0], [0], [1], [0, 0, 1, 1], [], []>} : vector<128x128xbf16>, vector<128x128xbf16>, vector<128x128xf32> -> vector<128x128xf32>
    %24 = arith.truncf %23 : vector<128x128xf32> to vector<128x128xbf16>
    %cst_19 = arith.constant dense<0.000000e+00> : vector<128x128xf32>
    %25 = tpu.matmul %0, %24, %cst_19 {dimension_numbers = #tpu.dot_dimension_numbers<[1], [0], [0], [1], [0, 0, 1, 1], [], []>} : vector<128x128xbf16>, vector<128x128xbf16>, vector<128x128xf32> -> vector<128x128xf32>
    %c0_20 = arith.constant 0 : index
    %c0_21 = arith.constant 0 : index
    %26 = vector.load %arg8[%c0_20, %c0_21] : memref<1x128xf32, #tpu.memory_space<vmem>>, vector<1x128xf32>
    %27 = vector.broadcast %26 : vector<1x128xf32> to vector<128x128xf32>
    %28 = arith.addf %25, %27 : vector<128x128xf32>
    %c0_22 = arith.constant 0 : index
    %c0_23 = arith.constant 0 : index
    %29 = vector.load %arg1[%c0_22, %c0_23] : memref<16x128xbf16, #tpu.memory_space<vmem>>, vector<16x128xbf16>
    %30 = arith.truncf %28 : vector<128x128xf32> to vector<128x128xbf16>
    %cst_24 = arith.constant dense<0.000000e+00> : vector<16x128xf32>
    %31 = tpu.matmul %29, %30, %cst_24 {dimension_numbers = #tpu.dot_dimension_numbers<[1], [0], [0], [1], [0, 0, 1, 1], [], []>} : vector<16x128xbf16>, vector<128x128xbf16>, vector<16x128xf32> -> vector<16x128xf32>
    %32 = arith.truncf %31 : vector<16x128xf32> to vector<16x128xbf16>
    %c0_25 = arith.constant 0 : index
    %c0_26 = arith.constant 0 : index
    %33 = vector.load %arg9[%c0_25, %c0_26] : memref<128x128xbf16, #tpu.memory_space<vmem>>, vector<128x128xbf16>
    %cst_27 = arith.constant dense<0.000000e+00> : vector<16x128xf32>
    %34 = tpu.matmul %32, %33, %cst_27 {dimension_numbers = #tpu.dot_dimension_numbers<[1], [0], [0], [1], [0, 0, 1, 1], [], []>} : vector<16x128xbf16>, vector<128x128xbf16>, vector<16x128xf32> -> vector<16x128xf32>
    %c0_28 = arith.constant 0 : index
    %c0_29 = arith.constant 0 : index
    %35 = vector.load %arg10[%c0_28, %c0_29] : memref<1x128xf32, #tpu.memory_space<vmem>>, vector<1x128xf32>
    %36 = vector.broadcast %35 : vector<1x128xf32> to vector<16x128xf32>
    %37 = arith.addf %34, %36 : vector<16x128xf32>
    %c0_30 = arith.constant 0 : index
    %c0_31 = arith.constant 0 : index
    %38 = vector.load %arg11[%c0_30, %c0_31] : memref<16x128xf32, #tpu.memory_space<vmem>>, vector<16x128xf32>
    tpu.vector_store %arg11[%c0_30, %c0_31], %37 {strides = array<i32>} : memref<16x128xf32, #tpu.memory_space<vmem>>, vector<16x128xf32>,
    return
  }
}

</mosaic_0001>

<bundles_post_ra>
// kernel: gcn_forward.1
= control target key start
LH: loop header
LB: loop body
LE: loop exit
PB: predicated region body
PF: predicated region fallthrough
CT: control target
= control target key end

     0   :  { %vm3489_vm0 = vmmov 0   ;;  %s4241_s3 = inlined_call_operand.vmem [shape: bf16[1152,128], index: 3, kind: input, shape index: {}]   ;;  %s4242_s2 = inlined_call_operand.vmem [shape: bf16[128,1152], index: 2, kind: input, shape index: {}]   ;;  %s4243_s0 = inlined_call_operand.vmem [shape: bf16[128,128], index: 0, kind: input, shape index: {}]   ;;  %s4244_s5 = inlined_call_operand.vmem [shape: bf16[128,128], index: 5, kind: input, shape index: {}]   ;;  %s4245_s4 = inlined_call_operand.vmem [shape: f32[1,128], index: 4, kind: input, shape index: {}]   ;;  %s4246_s7 = inlined_call_operand.vmem [shape: bf16[128,128], index: 7, kind: input, shape index: {}]   ;;  %s4247_s6 = inlined_call_operand.vmem [shape: f32[1,128], index: 6, kind: input, shape index: {}]   ;;  %s4248_s1 = inlined_call_operand.vmem [shape: bf16[16,128], index: 1, kind: input, shape index: {}]   ;;  %s4249_s9 = inlined_call_operand.vmem [shape: bf16[128,128], index: 9, kind: input, shape index: {}]   ;;  %s4250_s8 = inlined_call_operand.vmem [shape: f32[1,128], index: 8, kind: input, shape index: {}]   ;;  %s4251_s10 = inlined_call_operand.vmem [shape: f32[1,128], index: 10, kind: input, shape index: {}]   ;;  %s4252_s11 = inlined_call_operand.vmem [shape: f32[16,128], index: 11, kind: output, shape index: {}]  }
   0x1   :  { %v3279_v0 = vld [vmem:[%s4241_s3 + $0x40] sm:$0xff]   ;;  %v3283_v4 = vld [vmem:[%s4241_s3 + $0x48] sm:$0xff]   ;;  %v3287_v8 = vld [vmem:[%s4241_s3 + $0x50] sm:$0xff]  }
   0x2   :  { %v3280_v1 = vld [vmem:[%s4241_s3 + $0xc0] sm:$0xff]   ;;  %2675 = vmatprep.subr.bf16.mxu0 %v3279_v0  ;;  %v3284_v5 = vld [vmem:[%s4241_s3 + $0xc8] sm:$0xff]   ;;  %v3288_v9 = vld [vmem:[%s4241_s3 + $0xd0] sm:$0xff]  }
   0x3   :  { %v3281_v2 = vld [vmem:[%s4241_s3] sm:$0xff]   ;;  %2739 = vmatprep.subr.bf16.mxu1 %v3280_v1  ;;  %v3285_v6 = vld [vmem:[%s4241_s3 + $0x8] sm:$0xff]   ;;  %v3289_v10 = vld [vmem:[%s4241_s3 + $0x10] sm:$0xff]  }
   0x4   :  { %v3282_v3 = vld [vmem:[%s4241_s3 + $0x80] sm:$0xff]   ;;  %2676 = vmatpush3.bf16.msra.mxu0 %v3281_v2  ;;  %v3286_v7 = vld [vmem:[%s4241_s3 + $0x88] sm:$0xff]   ;;  %v3290_v11 = vld [vmem:[%s4241_s3 + $0x90] sm:$0xff]  }
   0x5   :  { %2740 = vmatpush3.bf16.msra.mxu1 %v3282_v3  ;;  %2677 = vmatprep.subr.bf16.mxu0 %v3283_v4  ;;  %v3291_v12 = vld [vmem:[%s4241_s3 + $0x58] sm:$0xff]   ;;  %v3295_v16 = vld [vmem:[%s4241_s3 + $0x60] sm:$0xff]   ;;  %v3299_v20 = vld [vmem:[%s4241_s3 + $0x68] sm:$0xff]  }
   0x6   :  { %2741 = vmatprep.subr.bf16.mxu1 %v3284_v5  ;;  %v3292_v13 = vld [vmem:[%s4241_s3 + $0xd8] sm:$0xff]   ;;  %v3296_v17 = vld [vmem:[%s4241_s3 + $0xe0] sm:$0xff]   ;;  %v3300_v21 = vld [vmem:[%s4241_s3 + $0xe8] sm:$0xff]  }
   0x7   :  { %v3293_v14 = vld [vmem:[%s4241_s3 + $0x18] sm:$0xff]   ;;  %v3297_v18 = vld [vmem:[%s4241_s3 + $0x20] sm:$0xff]   ;;  %v3301_v22 = vld [vmem:[%s4241_s3 + $0x28] sm:$0xff]  }
   0x8   :  { %2678 = vmatpush3.bf16.msra.mxu0 %v3285_v6  ;;  %v3294_v15 = vld [vmem:[%s4241_s3 + $0x98] sm:$0xff]   ;;  %v3298_v19 = vld [vmem:[%s4241_s3 + $0xa0] sm:$0xff]   ;;  %v3302_v23 = vld [vmem:[%s4241_s3 + $0xa8] sm:$0xff]  }
   0x9   :  { %2742 = vmatpush3.bf16.msra.mxu1 %v3286_v7  ;;  %2679 = vmatprep.subr.bf16.mxu0 %v3287_v8  ;;  %v3303_v24 = vld [vmem:[%s4241_s3 + $0x70] sm:$0xff]   ;;  %v3307_v28 = vld [vmem:[%s4241_s3 + $0x78] sm:$0xff]   ;;  %v3311_v32 = vld [vmem:[%s4242_s2] ss:$36 sps:$4 sm:$0xff]  }
   0xa   :  { %2743 = vmatprep.subr.bf16.mxu1 %v3288_v9  ;;  %v3304_v25 = vld [vmem:[%s4241_s3 + $0xf0] sm:$0xff]   ;;  %v3308_v29 = vld [vmem:[%s4241_s3 + $0xf8] sm:$0xff]   ;;  %v3313_v33 = vld [vmem:[%s4242_s2 + $0x4] ss:$36 sps:$4 sm:$0xff]  }
   0xb   :  { %v3305_v26 = vld [vmem:[%s4241_s3 + $0x30] sm:$0xff]   ;;  %v3309_v30 = vld [vmem:[%s4241_s3 + $0x38] sm:$0xff]   ;;  %v3314_v34 = vld [vmem:[%s4242_s2 + $0x8] ss:$36 sps:$4 sm:$0xff]   ;;  %1111 = vmatprep.mubr.bf16.mxu0 %v3313_v33 }
   0xc   :  { %2680 = vmatpush3.bf16.msra.mxu0 %v3289_v10  ;;  %v3306_v27 = vld [vmem:[%s4241_s3 + $0xb0] sm:$0xff]   ;;  %v3310_v31 = vld [vmem:[%s4241_s3 + $0xb8] sm:$0xff]   ;;  %v3321_v38 = vld [vmem:[%s4242_s2 + $0x48] ss:$36 sps:$4 sm:$0xff]  }
   0xd   :  { %2744 = vmatpush3.bf16.msra.mxu1 %v3290_v11  ;;  %2681 = vmatprep.subr.bf16.mxu0 %v3291_v12  ;;  %v3316_v35 = vld [vmem:[%s4242_s2 + $0xc] ss:$36 sps:$4 sm:$0xff]   ;;  %v3319_v37 = vld [vmem:[%s4242_s2 + $0x54] ss:$36 sps:$4 sm:$0xff]   ;;  %v3325_v41 = vld [vmem:[%s4242_s2 + $0x9c] ss:$36 sps:$4 sm:$0xff]  }
   0xe   :  { %2745 = vmatprep.subr.bf16.mxu1 %v3292_v13  ;;  %v3317_v36 = vld [vmem:[%s4242_s2 + $0x4c] ss:$36 sps:$4 sm:$0xff]   ;;  %1208 = vmatprep.mubr.bf16.mxu1 %v3316_v35  ;;  %v3323_v40 = vld [vmem:[%s4242_s2 + $0x94] ss:$36 sps:$4 sm:$0xff]   ;;  %v3341_v43 = vld [vmem:[%s4241_s3 + $0x140] sm:$0xff]  }
   0xf   :  { %v3322_v39 = vld [vmem:[%s4242_s2 + $0x50] ss:$36 sps:$4 sm:$0xff]   ;;  %v3328_v44 = vld [vmem:[%s4242_s2 + $0x98] ss:$36 sps:$4 sm:$0xff]   ;;  %v3342_v46 = vld [vmem:[%s4241_s3 + $0x100] sm:$0xff]  }
  0x10   :  { %2682 = vmatpush3.bf16.msra.mxu0 %v3293_v14  ;;  %v3327_v42 = vld [vmem:[%s4242_s2 + $0x90] ss:$36 sps:$4 sm:$0xff]   ;;  %v3329_v45 = vld [vmem:[%s4242_s2 + $0xdc] ss:$36 sps:$4 sm:$0xff]   ;;  %v3331_v47 = vld [vmem:[%s4242_s2 + $0xe4] ss:$36 sps:$4 sm:$0xff]  }
  0x11   :  { %2746 = vmatpush3.bf16.msra.mxu1 %v3294_v15  ;;  %2683 = vmatprep.subr.bf16.mxu0 %v3295_v16  ;;  %v3343_v48 = vld [vmem:[%s4241_s3 + $0x1c0] sm:$0xff]   ;;  %v3345_v50 = vld [vmem:[%s4241_s3 + $0x148] sm:$0xff]   ;;  %v3333_v53 = vld [vmem:[%s4242_s2 + $0xd8] ss:$36 sps:$4 sm:$0xff]  }
  0x12   :  { %2747 = vmatprep.subr.bf16.mxu1 %v3296_v17  ;;  %v3344_v49 = vld [vmem:[%s4241_s3 + $0x180] sm:$0xff]   ;;  %v3346_v51 = vld [vmem:[%s4241_s3 + $0x108] sm:$0xff]   ;;  %v3355_v58 = vld [vmem:[%s4241_s3 + $0x150] sm:$0xff]  }
  0x13   :  { %v3347_v52 = vld [vmem:[%s4241_s3 + $0x1c8] sm:$0xff]   ;;  %v3334_v54 = vld [vmem:[%s4242_s2 + $0xe0] ss:$36 sps:$4 sm:$0xff]   ;;  %v3356_v59 = vld [vmem:[%s4241_s3 + $0x110] sm:$0xff]  }
  0x14   :  { %2684 = vmatpush3.bf16.msra.mxu0 %v3297_v18  ;;  %v3335_v55 = vld [vmem:[%s4242_s2 + $0x124] ss:$36 sps:$4 sm:$0xff]   ;;  %v3337_v57 = vld [vmem:[%s4242_s2 + $0x12c] ss:$36 sps:$4 sm:$0xff]   ;;  %v3359_v62 = vld [vmem:[%s4241_s3 + $0x158] sm:$0xff]  }
  0x15   :  { %2748 = vmatpush3.bf16.msra.mxu1 %v3298_v19  ;;  %2685 = vmatprep.subr.bf16.mxu0 %v3299_v20  ;;  %v3352_v56 = vld [vmem:[%s4241_s3 + $0x188] sm:$0xff]   ;;  %v3357_v60 = vld [vmem:[%s4241_s3 + $0x1d0] sm:$0xff]   ;;  %v3360_v63 = vld [vmem:[%s4241_s3 + $0x118] sm:$0xff]  }
  0x16   :  { %2749 = vmatprep.subr.bf16.mxu1 %v3300_v21  ;;  %v3358_v61 = vld [vmem:[%s4241_s3 + $0x190] sm:$0xff]   ;;  %v3339_v0 = vld [vmem:[%s4242_s2 + $0x120] ss:$36 sps:$4 sm:$0xff]   ;;  %v3361_v1 = vld [vmem:[%s4241_s3 + $0x1d8] sm:$0xff]  }
  0x17   :  { %v3340_v2 = vld [vmem:[%s4242_s2 + $0x128] ss:$36 sps:$4 sm:$0xff]   ;;  %v3366_v4 = vld [vmem:[%s4241_s3 + $0x198] sm:$0xff]   ;;  %v3369_v6 = vld [vmem:[%s4241_s3 + $0x160] sm:$0xff]  }
  0x18   :  { %2686 = vmatpush3.bf16.msra.mxu0 %v3301_v22  ;;  %v3348_v3 = vld [vmem:[%s4242_s2 + $0x16c] ss:$36 sps:$4 sm:$0xff]   ;;  %v3350_v5 = vld [vmem:[%s4242_s2 + $0x174] ss:$36 sps:$4 sm:$0xff]   ;;  %v3370_v7 = vld [vmem:[%s4241_s3 + $0x120] sm:$0xff]  }
  0x19   :  { %2750 = vmatpush3.bf16.msra.mxu1 %v3302_v23  ;;  %2687 = vmatprep.subr.bf16.mxu0 %v3303_v24  ;;  %v3371_v8 = vld [vmem:[%s4241_s3 + $0x1e0] sm:$0xff]   ;;  %v3353_v9 = vld [vmem:[%s4242_s2 + $0x168] ss:$36 sps:$4 sm:$0xff]   ;;  %v3354_v11 = vld [vmem:[%s4242_s2 + $0x170] ss:$36 sps:$4 sm:$0xff]  }
  0x1a   :  { %2751 = vmatprep.subr.bf16.mxu1 %v3304_v25  ;;  %v3372_v10 = vld [vmem:[%s4241_s3 + $0x1a0] sm:$0xff]   ;;  %v3362_v12 = vld [vmem:[%s4242_s2 + $0x1b4] ss:$36 sps:$4 sm:$0xff]   ;;  %v3373_v13 = vld [vmem:[%s4241_s3 + $0x168] sm:$0xff]  }
  0x1b   :  { %v3374_v14 = vld [vmem:[%s4241_s3 + $0x128] sm:$0xff]   ;;  %v3364_v16 = vld [vmem:[%s4242_s2 + $0x1bc] ss:$36 sps:$4 sm:$0xff]   ;;  %v3367_v18 = vld [vmem:[%s4242_s2 + $0x1b0] ss:$36 sps:$4 sm:$0xff]  }
  0x1c   :  { %2688 = vmatpush3.bf16.msra.mxu0 %v3305_v26  ;;  %v3375_v15 = vld [vmem:[%s4241_s3 + $0x1e8] sm:$0xff]   ;;  %v3383_v19 = vld [vmem:[%s4241_s3 + $0x170] sm:$0xff]   ;;  %v3368_v20 = vld [vmem:[%s4242_s2 + $0x1b8] ss:$36 sps:$4 sm:$0xff]  }
  0x1d   :  { %2752 = vmatpush3.bf16.msra.mxu1 %v3306_v27  ;;  %2689 = vmatprep.subr.bf16.mxu0 %v3307_v28  ;;  %v3380_v17 = vld [vmem:[%s4241_s3 + $0x1a8] sm:$0xff]   ;;  %v3376_v21 = vld [vmem:[%s4242_s2 + $0x1fc] ss:$36 sps:$4 sm:$0xff]   ;;  %v3384_v22 = vld [vmem:[%s4241_s3 + $0x130] sm:$0xff]  }
  0x1e   :  { %2753 = vmatprep.subr.bf16.mxu1 %v3308_v29  ;;  %v3378_v23 = vld [vmem:[%s4242_s2 + $0x204] ss:$36 sps:$4 sm:$0xff]   ;;  %v3385_v24 = vld [vmem:[%s4241_s3 + $0x1f0] sm:$0xff]   ;;  %v3387_v26 = vld [vmem:[%s4241_s3 + $0x178] sm:$0xff]  }
  0x1f   :  { %v3386_v25 = vld [vmem:[%s4241_s3 + $0x1b0] sm:$0xff]   ;;  %v3388_v27 = vld [vmem:[%s4241_s3 + $0x138] sm:$0xff]  }
  0x20   :  { %2690 = vmatpush3.bf16.msra.mxu0 %v3309_v30  ;;  %v3389_v28 = vld [vmem:[%s4241_s3 + $0x1f8] sm:$0xff]  }
  0x21   :  { %2754 = vmatpush3.bf16.msra.mxu1 %v3310_v31  ;;  %2803 = vmatprep.subr.bf16.mxu0 %v3341_v43  ;;  %v3393_v29 = vld [vmem:[%s4241_s3 + $0x1b8] sm:$0xff]   ;;  %v3382_v31 = vld [vmem:[%s4242_s2 + $0x200] ss:$36 sps:$4 sm:$0xff]  }
  0x22   :  { %2867 = vmatprep.subr.bf16.mxu1 %v3343_v48  ;;  %v3381_v30 = vld [vmem:[%s4242_s2 + $0x1f8] ss:$36 sps:$4 sm:$0xff]   ;;  %v3403_v43 = vld [vmem:[%s4242_s2 + $0xa4] ss:$36 sps:$4 sm:$0xff]  }
  0x23   :  { %1112 = vmatmul.mubr.bf16.vlgmr.msra.gmra.mrb[0].mxu0 %v3311_v32  ;;  %v3392_v32 = vld [vmem:[%s4242_s2 + $0x14] ss:$36 sps:$4 sm:$0xff]   ;;  %v3396_v33 = vld [vmem:[%s4242_s2 + $0x1c] ss:$36 sps:$4 sm:$0xff]   ;;  %v3408_v48 = vld [vmem:[%s4242_s2 + $0xa8] ss:$36 sps:$4 sm:$0xff]  }
  0x24   :  { %1209 = vmatmul.mubr.bf16.vlgmr.msra.gmra.mrb[0].mxu1 %v3314_v34  ;;  %1119 = vmatprep.mubr.bf16.mxu0 %v3317_v36  ;;  %v3390_v34 = vld [vmem:[%s4242_s2 + $0x10] ss:$36 sps:$4 sm:$0xff]   ;;  %v3394_v35 = vld [vmem:[%s4242_s2 + $0x18] ss:$36 sps:$4 sm:$0xff]  }
  0x25   :  { %1216 = vmatprep.mubr.bf16.mxu1 %v3319_v37  ;;  %2804 = vmatpush3.bf16.msra.mxu0 %v3342_v46  ;;  %v3397_v36 = vld [vmem:[%s4242_s2 + $0x5c] ss:$36 sps:$4 sm:$0xff]   ;;  %v3400_v37 = vld [vmem:[%s4242_s2 + $0x64] ss:$36 sps:$4 sm:$0xff]  }
  0x26   :  { %2868 = vmatpush3.bf16.msra.mxu1 %v3344_v49  ;;  %2805 = vmatprep.subr.bf16.mxu0 %v3345_v50  ;;  %v3434_v46 = vld [vmem:[%s4241_s3 + $0x220] sm:$0xff]   ;;  %v3409_v49 = vld [vmem:[%s4242_s2 + $0xec] ss:$36 sps:$4 sm:$0xff]   ;;  %v3412_v50 = vld [vmem:[%s4242_s2 + $0xf4] ss:$36 sps:$4 sm:$0xff]  }
  0x27   :  { %2869 = vmatprep.subr.bf16.mxu1 %v3347_v52  ;;  %v3411_v52 = vld [vmem:[%s4242_s2 + $0xe8] ss:$36 sps:$4 sm:$0xff]  }
  0x29   :  { %2806 = vmatpush3.bf16.msra.mxu0 %v3346_v51  ;;  %v3438_v51 = vld [vmem:[%s4241_s3 + $0x228] sm:$0xff]  }
  0x2a   :  { %2870 = vmatpush3.bf16.msra.mxu1 %v3352_v56  ;;  %2807 = vmatprep.subr.bf16.mxu0 %v3355_v58  ;;  %v3419_v56 = vld [vmem:[%s4242_s2 + $0x13c] ss:$36 sps:$4 sm:$0xff]   ;;  %v3417_v58 = vld [vmem:[%s4242_s2 + $0x130] ss:$36 sps:$4 sm:$0xff]  }
  0x2b   :  { %1120 = vmatmul.mubr.bf16.gmra.mrb[4].mxu0 %v3321_v38  ;;  %2871 = vmatprep.subr.bf16.mxu1 %v3357_v60  ;;  %v3418_v38 = vld [vmem:[%s4241_s3 + $0x200] sm:$0xff]  }
  0x2c   :  { %1217 = vmatmul.mubr.bf16.gmra.mrb[4].mxu1 %v3322_v39  ;;  %1127 = vmatprep.mubr.bf16.mxu0 %v3323_v40  ;;  %v3422_v39 = vld [vmem:[%s4241_s3 + $0x208] sm:$0xff]   ;;  %v3399_v40 = vld [vmem:[%s4242_s2 + $0x58] ss:$36 sps:$4 sm:$0xff]  }
  0x2d   :  { %1224 = vmatprep.mubr.bf16.mxu1 %v3325_v41  ;;  %2808 = vmatpush3.bf16.msra.mxu0 %v3356_v59  ;;  %v3426_v41 = vld [vmem:[%s4241_s3 + $0x210] sm:$0xff]   ;;  %v3421_v59 = vld [vmem:[%s4242_s2 + $0x138] ss:$36 sps:$4 sm:$0xff]  }
  0x2e   :  { %2872 = vmatpush3.bf16.msra.mxu1 %v3358_v61  ;;  %2809 = vmatprep.subr.bf16.mxu0 %v3359_v62  ;;  %v3423_v60 = vld [vmem:[%s4242_s2 + $0x17c] ss:$36 sps:$4 sm:$0xff]   ;;  %v3427_v61 = vld [vmem:[%s4242_s2 + $0x184] ss:$36 sps:$4 sm:$0xff]  }
  0x2f   :  { %2873 = vmatprep.subr.bf16.mxu1 %v3361_v1  ;;  %v3425_v62 = vld [vmem:[%s4242_s2 + $0x178] ss:$36 sps:$4 sm:$0xff]   ;;  %v3435_v1 = vld [vmem:[%s4242_s2 + $0x1cc] ss:$36 sps:$4 sm:$0xff]  }
  0x31   :  { %2810 = vmatpush3.bf16.msra.mxu0 %v3360_v63  ;;  %v3429_v63 = vld [vmem:[%s4242_s2 + $0x180] ss:$36 sps:$4 sm:$0xff]  }
  0x32   :  { %2874 = vmatpush3.bf16.msra.mxu1 %v3366_v4  ;;  %2811 = vmatprep.subr.bf16.mxu0 %v3369_v6  ;;  %v3439_v4 = vld [vmem:[%s4242_s2 + $0x20c] ss:$36 sps:$4 sm:$0xff]  }
  0x33   :  { %1128 = vmatmul.mubr.bf16.gmra.mrb[8].mxu0 %v3327_v42  ;;  %2875 = vmatprep.subr.bf16.mxu1 %v3371_v8  ;;  %v3402_v42 = vld [vmem:[%s4242_s2 + $0x60] ss:$36 sps:$4 sm:$0xff]   ;;  %v3441_v6 = vld [vmem:[%s4242_s2 + $0x208] ss:$36 sps:$4 sm:$0xff]  }
  0x34   :  { %1225 = vmatmul.mubr.bf16.gmra.mrb[8].mxu1 %v3328_v44  ;;  %1135 = vmatprep.mubr.bf16.mxu0 %v3329_v45  ;;  %v3406_v44 = vld [vmem:[%s4242_s2 + $0xac] ss:$36 sps:$4 sm:$0xff]   ;;  %v3430_v45 = vld [vmem:[%s4241_s3 + $0x218] sm:$0xff]   ;;  %v3447_v8 = vld [vmem:[%s4242_s2 + $0x20] ss:$36 sps:$4 sm:$0xff]  }
  0x35   :  { %1232 = vmatprep.mubr.bf16.mxu1 %v3331_v47  ;;  %2812 = vmatpush3.bf16.msra.mxu0 %v3370_v7  ;;  %v3405_v47 = vld [vmem:[%s4242_s2 + $0xa0] ss:$36 sps:$4 sm:$0xff]   ;;  %v3445_v7 = vld [vmem:[%s4242_s2 + $0x210] ss:$36 sps:$4 sm:$0xff]  }
  0x36   :  { %2876 = vmatpush3.bf16.msra.mxu1 %v3372_v10  ;;  %2813 = vmatprep.subr.bf16.mxu0 %v3373_v13  ;;  %v3449_v10 = vld [vmem:[%s4242_s2 + $0xb0] ss:$36 sps:$4 sm:$0xff]   ;;  %v3452_v13 = vld [vmem:[%s4242_s2 + $0x188] ss:$36 sps:$4 sm:$0xff]  }
  0x37   :  { %2877 = vmatprep.subr.bf16.mxu1 %v3375_v15  ;;  %v3454_v15 = vld [vmem:[%s4242_s2 + $0x218] ss:$36 sps:$4 sm:$0xff]  }
  0x39   :  { %2814 = vmatpush3.bf16.msra.mxu0 %v3374_v14  ;;  %v3453_v14 = vld [vmem:[%s4242_s2 + $0x1d0] ss:$36 sps:$4 sm:$0xff]  }
  0x3a   :  { %2878 = vmatpush3.bf16.msra.mxu1 %v3380_v17  ;;  %2815 = vmatprep.subr.bf16.mxu0 %v3383_v19 }
  0x3b   :  { %1136 = vmatmul.mubr.bf16.gmra.mrb[12].mxu0 %v3333_v53  ;;  %2879 = vmatprep.subr.bf16.mxu1 %v3385_v24  ;;  %v3442_v53 = vld [vmem:[%s4241_s3 + $0x230] sm:$0xff]  }
  0x3c   :  { %1233 = vmatmul.mubr.bf16.gmra.mrb[12].mxu1 %v3334_v54  ;;  %1143 = vmatprep.mubr.bf16.mxu0 %v3335_v55  ;;  %v3414_v54 = vld [vmem:[%s4242_s2 + $0xf0] ss:$36 sps:$4 sm:$0xff]  }
  0x3d   :  { %1240 = vmatprep.mubr.bf16.mxu1 %v3337_v57  ;;  %2816 = vmatpush3.bf16.msra.mxu0 %v3384_v22  ;;  %v3415_v55 = vld [vmem:[%s4242_s2 + $0x134] ss:$36 sps:$4 sm:$0xff]  }
  0x3e   :  { %2880 = vmatpush3.bf16.msra.mxu1 %v3386_v25  ;;  %2817 = vmatprep.subr.bf16.mxu0 %v3387_v26  ;;  %v3446_v57 = vld [vmem:[%s4241_s3 + $0x238] sm:$0xff]  }
  0x3f   :  { %2881 = vmatprep.subr.bf16.mxu1 %v3389_v28 }
  0x41   :  { %2818 = vmatpush3.bf16.msra.mxu0 %v3388_v27 }
  0x42   :  { %2882 = vmatpush3.bf16.msra.mxu1 %v3393_v29  ;;  %3045 = vmatprep.subr.bf16.mxu0 %v3418_v38 }
  0x43   :  { %1144 = vmatmul.mubr.bf16.gmra.mrb[16].mxu0 %v3339_v0  ;;  %v3431_v0 = vld [vmem:[%s4242_s2 + $0x1c4] ss:$36 sps:$4 sm:$0xff]  }
  0x44   :  { %1241 = vmatmul.mubr.bf16.gmra.mrb[16].mxu1 %v3340_v2  ;;  %1151 = vmatprep.mubr.bf16.mxu0 %v3348_v3  ;;  %v3433_v2 = vld [vmem:[%s4242_s2 + $0x1c0] ss:$36 sps:$4 sm:$0xff]   ;;  %v3437_v3 = vld [vmem:[%s4242_s2 + $0x1c8] ss:$36 sps:$4 sm:$0xff]  }
  0x45   :  { %1248 = vmatprep.mubr.bf16.mxu1 %v3350_v5  ;;  %v3443_v5 = vld [vmem:[%s4242_s2 + $0x214] ss:$36 sps:$4 sm:$0xff]  }
  0x4b   :  { %1152 = vmatmul.mubr.bf16.gmra.mrb[20].mxu0 %v3353_v9  ;;  %v3448_v9 = vld [vmem:[%s4242_s2 + $0x68] ss:$36 sps:$4 sm:$0xff]  }
  0x4c   :  { %1249 = vmatmul.mubr.bf16.gmra.mrb[20].mxu1 %v3354_v11  ;;  %1159 = vmatprep.mubr.bf16.mxu0 %v3362_v12  ;;  %v3450_v11 = vld [vmem:[%s4242_s2 + $0xf8] ss:$36 sps:$4 sm:$0xff]   ;;  %v3451_v12 = vld [vmem:[%s4242_s2 + $0x140] ss:$36 sps:$4 sm:$0xff]  }
  0x4d   :  { %1256 = vmatprep.mubr.bf16.mxu1 %v3364_v16 }
  0x53   :  { %1160 = vmatmul.mubr.bf16.gmra.mrb[24].mxu0 %v3367_v18 }
  0x54   :  { %1257 = vmatmul.mubr.bf16.gmra.mrb[24].mxu1 %v3368_v20  ;;  %1167 = vmatprep.mubr.bf16.mxu0 %v3376_v21 }
  0x55   :  { %1264 = vmatprep.mubr.bf16.mxu1 %v3378_v23 }
  0x5b   :  { %1168 = vmatmul.mubr.bf16.gmra.mrb[28].mxu0 %v3381_v30 }
  0x5c   :  { %1265 = vmatmul.mubr.bf16.gmra.mrb[28].mxu1 %v3382_v31  ;;  %1305 = vmatprep.mubr.bf16.mxu0 %v3392_v32 }
  0x5d   :  { %1402 = vmatprep.mubr.bf16.mxu1 %v3396_v33 }
  0x63   :  { %1306 = vmatmul.mubr.bf16.vlgmr.msra.gmra.mrb[32].mxu0 %v3390_v34 }
  0x64   :  { %1403 = vmatmul.mubr.bf16.vlgmr.msra.gmra.mrb[32].mxu1 %v3394_v35  ;;  %1313 = vmatprep.mubr.bf16.mxu0 %v3397_v36 }
  0x65   :  { %1410 = vmatprep.mubr.bf16.mxu1 %v3400_v37  ;;  %3046 = vmatpush3.bf16.msra.mxu0 %v3418_v38 }
  0x66   :  { %3047 = vmatprep.subr.bf16.mxu0 %v3422_v39 }
  0x69   :  { %3048 = vmatpush3.bf16.msra.mxu0 %v3422_v39 }
  0x6a   :  { %3049 = vmatprep.subr.bf16.mxu0 %v3426_v41 }
  0x6b   :  { %1314 = vmatmul.mubr.bf16.gmra.mrb[36].mxu0 %v3399_v40 }
  0x6c   :  { %1411 = vmatmul.mubr.bf16.gmra.mrb[36].mxu1 %v3402_v42  ;;  %1321 = vmatprep.mubr.bf16.mxu0 %v3403_v43 }
  0x6d   :  { %1418 = vmatprep.mubr.bf16.mxu1 %v3406_v44  ;;  %3050 = vmatpush3.bf16.msra.mxu0 %v3426_v41 }
  0x6e   :  { %3051 = vmatprep.subr.bf16.mxu0 %v3430_v45 }
  0x71   :  { %3052 = vmatpush3.bf16.msra.mxu0 %v3430_v45 }
  0x72   :  { %3053 = vmatprep.subr.bf16.mxu0 %v3434_v46 }
  0x73   :  { %1322 = vmatmul.mubr.bf16.gmra.mrb[40].mxu0 %v3405_v47 }
  0x74   :  { %1419 = vmatmul.mubr.bf16.gmra.mrb[40].mxu1 %v3408_v48  ;;  %1329 = vmatprep.mubr.bf16.mxu0 %v3409_v49 }
  0x75   :  { %1426 = vmatprep.mubr.bf16.mxu1 %v3412_v50  ;;  %3054 = vmatpush3.bf16.msra.mxu0 %v3434_v46 }
  0x76   :  { %3055 = vmatprep.subr.bf16.mxu0 %v3438_v51 }
  0x79   :  { %3056 = vmatpush3.bf16.msra.mxu0 %v3438_v51 }
  0x7a   :  { %3057 = vmatprep.subr.bf16.mxu0 %v3442_v53 }
  0x7b   :  { %1330 = vmatmul.mubr.bf16.gmra.mrb[44].mxu0 %v3411_v52 }
  0x7c   :  { %1427 = vmatmul.mubr.bf16.gmra.mrb[44].mxu1 %v3414_v54  ;;  %1337 = vmatprep.mubr.bf16.mxu0 %v3415_v55 }
  0x7d   :  { %1434 = vmatprep.mubr.bf16.mxu1 %v3419_v56  ;;  %3058 = vmatpush3.bf16.msra.mxu0 %v3442_v53 }
  0x7e   :  { %3059 = vmatprep.subr.bf16.mxu0 %v3446_v57 }
  0x81   :  { %3060 = vmatpush3.bf16.msra.mxu0 %v3446_v57 }
  0x83   :  { %1338 = vmatmul.mubr.bf16.gmra.mrb[48].mxu0 %v3417_v58 }
  0x84   :  { %1435 = vmatmul.mubr.bf16.gmra.mrb[48].mxu1 %v3421_v59  ;;  %1345 = vmatprep.mubr.bf16.mxu0 %v3423_v60 }
  0x85   :  { %1442 = vmatprep.mubr.bf16.mxu1 %v3427_v61 }
  0x8b   :  { %1346 = vmatmul.mubr.bf16.gmra.mrb[52].mxu0 %v3425_v62 }
  0x8c   :  { %1443 = vmatmul.mubr.bf16.gmra.mrb[52].mxu1 %v3429_v63  ;;  %1353 = vmatprep.mubr.bf16.mxu0 %v3431_v0 }
  0x8d   :  { %1450 = vmatprep.mubr.bf16.mxu1 %v3435_v1 }
  0x93   :  { %1354 = vmatmul.mubr.bf16.gmra.mrb[56].mxu0 %v3433_v2 }
  0x94   :  { %1451 = vmatmul.mubr.bf16.gmra.mrb[56].mxu1 %v3437_v3  ;;  %1361 = vmatprep.mubr.bf16.mxu0 %v3439_v4 }
  0x95   :  { %1458 = vmatprep.mubr.bf16.mxu1 %v3443_v5 }
  0x9b   :  { %1362 = vmatmul.mubr.bf16.gmra.mrb[60].mxu0 %v3441_v6 }
  0x9c   :  { %1459 = vmatmul.mubr.bf16.gmra.mrb[60].mxu1 %v3445_v7  ;;  %3061 = vmatprep.mubr.bf16.mxu0 %v3447_v8 }
  0xa3   :  { %3062 = vmatmul.mubr.bf16.vlgmr.msra.gmra.mrb[64].mxu0 %v3448_v9 }
  0xa4   :  { %3065 = vmatprep.mubr.bf16.mxu0 %v3449_v10 }
  0xab   :  { %3066 = vmatmul.mubr.bf16.gmra.mrb[68].mxu0 %v3450_v11 }
  0xac   :  { %3069 = vmatprep.mubr.bf16.mxu0 %v3451_v12 }
  0xb3   :  { %3070 = vmatmul.mubr.bf16.gmra.mrb[72].mxu0 %v3452_v13 }
  0xb4   :  { %3073 = vmatprep.mubr.bf16.mxu0 %v3453_v14 }
  0xbb   :  { %3074 = vmatmul.mubr.bf16.gmra.mrb[76].mxu0 %v3454_v15 }
  0xf6   :  { %v2691_v16 = vpop.f32.mrb[0].mxu0 }
  0xf7   :  { %v2755_v17 = vpop.f32.mrb[0].mxu1  ;;  %v2692_v18 = vpop.f32.mrb[1].mxu0 }
  0xf8   :  { %v2693_v19 = vadd.f32 %v2692_v18, %v2691_v16  ;;  %v2756_v20 = vpop.f32.mrb[1].mxu1  ;;  %v2694_v21 = vpop.f32.mrb[2].mxu0 }
  0xf9   :  { %v2757_v22 = vadd.f32 %v2756_v20, %v2755_v17  ;;  %v2758_v23 = vpop.f32.mrb[2].mxu1  ;;  %v2695_v24 = vpop.f32.mrb[3].mxu0 }
  0xfa   :  { %v2696_v25 = vadd.f32 %v2695_v24, %v2694_v21  ;;  %v2759_v26 = vpop.f32.mrb[3].mxu1  ;;  %v4003_v21 = vld [vmem:[%s4243_s0] sm:$0xff]  }
  0xfb   :  { %v3982_v27 = vadd.f32 %v2757_v22, %v2693_v19  ;;  %v2760_v28 = vadd.f32 %v2759_v26, %v2758_v23  ;;  %3093 = vmatprep.mubr.bf16.mxu1 %v4003_v21 }
  0xfd   :  { %v3984_v29 = vadd.f32 %v2760_v28, %v2696_v25 }
  0xfe   :  { %v2697_v30 = vpop.f32.mrb[4].mxu0 }
  0xff   :  { %v2761_v31 = vpop.f32.mrb[4].mxu1  ;;  %v2698_v32 = vpop.f32.mrb[5].mxu0 }
 0x100   :  { %v2699_v33 = vadd.f32 %v2698_v32, %v2697_v30  ;;  %v2762_v34 = vpop.f32.mrb[5].mxu1  ;;  %v2700_v35 = vpop.f32.mrb[6].mxu0 }
 0x101   :  { %v2763_v36 = vadd.f32 %v2762_v34, %v2761_v31  ;;  %v2764_v37 = vpop.f32.mrb[6].mxu1  ;;  %v2701_v38 = vpop.f32.mrb[7].mxu0 }
 0x102   :  { %v2702_v39 = vadd.f32 %v2701_v38, %v2700_v35  ;;  %v2765_v40 = vpop.f32.mrb[7].mxu1 }
 0x103   :  { %v3986_v41 = vadd.f32 %v2763_v36, %v2699_v33  ;;  %v2766_v42 = vadd.f32 %v2765_v40, %v2764_v37 }
 0x105   :  { %v3988_v43 = vadd.f32 %v2766_v42, %v2702_v39 }
 0x106   :  { %v2703_v44 = vpop.f32.mrb[8].mxu0 }
 0x107   :  { %v2767_v45 = vpop.f32.mrb[8].mxu1  ;;  %v2704_v46 = vpop.f32.mrb[9].mxu0 }
 0x108   :  { %v2705_v47 = vadd.f32 %v2704_v46, %v2703_v44  ;;  %v2768_v48 = vpop.f32.mrb[9].mxu1  ;;  %v2706_v49 = vpop.f32.mrb[10].mxu0 }
 0x109   :  { %v2769_v50 = vadd.f32 %v2768_v48, %v2767_v45  ;;  %v2770_v51 = vpop.f32.mrb[10].mxu1  ;;  %v2707_v52 = vpop.f32.mrb[11].mxu0 }
 0x10a   :  { %v2708_v53 = vadd.f32 %v2707_v52, %v2706_v49  ;;  %v2771_v54 = vpop.f32.mrb[11].mxu1 }
 0x10b   :  { %v3990_v55 = vadd.f32 %v2769_v50, %v2705_v47  ;;  %v2772_v56 = vadd.f32 %v2771_v54, %v2770_v51 }
 0x10d   :  { %v3992_v57 = vadd.f32 %v2772_v56, %v2708_v53 }
 0x10e   :  { %v2709_v58 = vpop.f32.mrb[12].mxu0 }
 0x10f   :  { %v2773_v59 = vpop.f32.mrb[12].mxu1  ;;  %v2710_v60 = vpop.f32.mrb[13].mxu0 }
 0x110   :  { %v2711_v61 = vadd.f32 %v2710_v60, %v2709_v58  ;;  %v2774_v62 = vpop.f32.mrb[13].mxu1  ;;  %v2712_v63 = vpop.f32.mrb[14].mxu0 }
 0x111   :  { %v2775_v0 = vadd.f32 %v2774_v62, %v2773_v59  ;;  %v2776_v1 = vpop.f32.mrb[14].mxu1  ;;  %v2713_v2 = vpop.f32.mrb[15].mxu0 }
 0x112   :  { %v2714_v3 = vadd.f32 %v2713_v2, %v2712_v63  ;;  %v2777_v4 = vpop.f32.mrb[15].mxu1 }
 0x113   :  { %v3994_v5 = vadd.f32 %v2775_v0, %v2711_v61  ;;  %v2778_v6 = vadd.f32 %v2777_v4, %v2776_v1 }
 0x115   :  { %v3996_v7 = vadd.f32 %v2778_v6, %v2714_v3 }
 0x116   :  { %v2715_v8 = vpop.f32.mrb[16].mxu0 }
 0x117   :  { %v2779_v9 = vpop.f32.mrb[16].mxu1  ;;  %v2716_v10 = vpop.f32.mrb[17].mxu0 }
 0x118   :  { %v2717_v11 = vadd.f32 %v2716_v10, %v2715_v8  ;;  %v2780_v12 = vpop.f32.mrb[17].mxu1  ;;  %v2718_v13 = vpop.f32.mrb[18].mxu0 }
 0x119   :  { %v2781_v14 = vadd.f32 %v2780_v12, %v2779_v9  ;;  %v2782_v15 = vpop.f32.mrb[18].mxu1  ;;  %v2719_v16 = vpop.f32.mrb[19].mxu0 }
 0x11a   :  { %v2720_v17 = vadd.f32 %v2719_v16, %v2718_v13  ;;  %v2783_v18 = vpop.f32.mrb[19].mxu1  ;;  %v3464_v16 = vld [vmem:[%s4244_s5 + $0x8] sm:$0xff]  }
 0x11b   :  { %v3998_v19 = vadd.f32 %v2781_v14, %v2717_v11  ;;  %v2784_v20 = vadd.f32 %v2783_v18, %v2782_v15  ;;  %v3463_v15 = vld [vmem:[%s4244_s5] sm:$0xff]  }
 0x11c   :  { %3109 = vmatprep.subr.bf16.mxu0 %v3463_v15 }
 0x11d   :  { %v4005_v22 = vadd.f32 %v2784_v20, %v2720_v17  ;;  %3110 = vmatpush3.bf16.msra.mxu0 %v3463_v15 }
 0x11e   :  { %v2721_v23 = vpop.f32.mrb[20].mxu0  ;;  %3111 = vmatprep.subr.bf16.mxu0 %v3464_v16 }
 0x11f   :  { %v2785_v24 = vpop.f32.mrb[20].mxu1  ;;  %v2722_v25 = vpop.f32.mrb[21].mxu0 }
 0x120   :  { %v2723_v26 = vadd.f32 %v2722_v25, %v2721_v23  ;;  %v2786_v28 = vpop.f32.mrb[21].mxu1  ;;  %v2724_v30 = vpop.f32.mrb[22].mxu0 }
 0x121   :  { %v2787_v31 = vadd.f32 %v2786_v28, %v2785_v24  ;;  %v2788_v32 = vpop.f32.mrb[22].mxu1  ;;  %v2725_v33 = vpop.f32.mrb[23].mxu0  ;;  %3112 = vmatpush3.bf16.msra.mxu0 %v3464_v16 }
 0x122   :  { %v2726_v34 = vadd.f32 %v2725_v33, %v2724_v30  ;;  %v2789_v35 = vpop.f32.mrb[23].mxu1 }
 0x123   :  { %v4008_v36 = vadd.f32 %v2787_v31, %v2723_v26  ;;  %v2790_v37 = vadd.f32 %v2789_v35, %v2788_v32  ;;  %v3465_v31 = vld [vmem:[%s4244_s5 + $0x10] sm:$0xff]  }
 0x124   :  { %3113 = vmatprep.subr.bf16.mxu0 %v3465_v31 }
 0x125   :  { %v4010_v38 = vadd.f32 %v2790_v37, %v2726_v34  ;;  %3114 = vmatpush3.bf16.msra.mxu0 %v3465_v31 }
 0x126   :  { %v2727_v39 = vpop.f32.mrb[24].mxu0 }
 0x127   :  { %v2791_v40 = vpop.f32.mrb[24].mxu1  ;;  %v2728_v42 = vpop.f32.mrb[25].mxu0 }
 0x128   :  { %v2729_v44 = vadd.f32 %v2728_v42, %v2727_v39  ;;  %v2792_v45 = vpop.f32.mrb[25].mxu1  ;;  %v2730_v46 = vpop.f32.mrb[26].mxu0 }
 0x129   :  { %v2793_v47 = vadd.f32 %v2792_v45, %v2791_v40  ;;  %v2794_v48 = vpop.f32.mrb[26].mxu1  ;;  %v2731_v49 = vpop.f32.mrb[27].mxu0 }
 0x12a   :  { %v2732_v50 = vadd.f32 %v2731_v49, %v2730_v46  ;;  %v2795_v51 = vpop.f32.mrb[27].mxu1 }
 0x12b   :  { %v4012_v52 = vadd.f32 %v2793_v47, %v2729_v44  ;;  %v2796_v53 = vadd.f32 %v2795_v51, %v2794_v48  ;;  %v3467_v51 = vld [vmem:[%s4244_s5 + $0x20] sm:$0xff]  }
 0x12d   :  { %v4014_v54 = vadd.f32 %v2796_v53, %v2732_v50 }
 0x12e   :  { %v2733_v56 = vpop.f32.mrb[28].mxu0 }
 0x12f   :  { %v2797_v58 = vpop.f32.mrb[28].mxu1  ;;  %v2734_v59 = vpop.f32.mrb[29].mxu0 }
 0x130   :  { %v2735_v60 = vadd.f32 %v2734_v59, %v2733_v56  ;;  %v2798_v61 = vpop.f32.mrb[29].mxu1  ;;  %v2736_v62 = vpop.f32.mrb[30].mxu0 }
 0x131   :  { %v2799_v63 = vadd.f32 %v2798_v61, %v2797_v58  ;;  %v2800_v0 = vpop.f32.mrb[30].mxu1  ;;  %v2737_v1 = vpop.f32.mrb[31].mxu0 }
 0x132   :  { %v2738_v2 = vadd.f32 %v2737_v1, %v2736_v62  ;;  %v2801_v3 = vpop.f32.mrb[31].mxu1 }
 0x133   :  { %v4016_v4 = vadd.f32 %v2799_v63, %v2735_v60  ;;  %v2802_v6 = vadd.f32 %v2801_v3, %v2800_v0 }
 0x135   :  { %v4018_v8 = vadd.f32 %v2802_v6, %v2738_v2 }
 0x136   :  { %v2819_v9 = vpop.f32.mrb[32].mxu0 }
 0x137   :  { %v2820_v10 = vpop.f32.mrb[33].mxu0  ;;  %v2883_v11 = vpop.f32.mrb[32].mxu1 }
 0x138   :  { %v2821_v12 = vadd.f32 %v2820_v10, %v2819_v9  ;;  %v2822_v13 = vpop.f32.mrb[34].mxu0  ;;  %v2884_v14 = vpop.f32.mrb[33].mxu1 }
 0x139   :  { %v2823_v17 = vpop.f32.mrb[35].mxu0  ;;  %v2885_v18 = vadd.f32 %v2884_v14, %v2883_v11  ;;  %v2886_v20 = vpop.f32.mrb[34].mxu1 }
 0x13a   :  { %v1308_v23 = vadd.f32 %v2821_v12, %v3982_v27  ;;  %v2824_v24 = vadd.f32 %v2823_v17, %v2822_v13  ;;  %v2887_v25 = vpop.f32.mrb[35].mxu1 }
 0x13b   :  { %v2888_v26 = vadd.f32 %v2887_v25, %v2886_v20 }
 0x13c   :  { %v1311_v28 = vadd.f32 %v2824_v24, %v3984_v29  ;;  %v4028_v30 = vadd.f32 %v2885_v18, %v1308_v23  ;;  %v3466_v29 = vld [vmem:[%s4244_s5 + $0x18] sm:$0xff]  }
 0x13d   :  { %3115 = vmatprep.subr.bf16.mxu0 %v3466_v29 }
 0x13e   :  { %v2825_v32 = vpop.f32.mrb[36].mxu0  ;;  %v4033_v33 = vadd.f32 %v2888_v26, %v1311_v28  ;;  %3116 = vmatpush3.bf16.msra.mxu0 %v3466_v29 }
 0x13f   :  { %v2826_v34 = vpop.f32.mrb[37].mxu0  ;;  %v2889_v35 = vpop.f32.mrb[36].mxu1  ;;  %3117 = vmatprep.subr.bf16.mxu0 %v3467_v51 }
 0x140   :  { %v2827_v27 = vadd.f32 %v2826_v34, %v2825_v32  ;;  %v2828_v37 = vpop.f32.mrb[38].mxu0  ;;  %v2890_v39 = vpop.f32.mrb[37].mxu1 }
 0x141   :  { %v2829_v40 = vpop.f32.mrb[39].mxu0  ;;  %v2891_v42 = vadd.f32 %v2890_v39, %v2889_v35  ;;  %v2892_v44 = vpop.f32.mrb[38].mxu1 }
 0x142   :  { %v1316_v45 = vadd.f32 %v2827_v27, %v3986_v41  ;;  %v2830_v46 = vadd.f32 %v2829_v40, %v2828_v37  ;;  %v2893_v47 = vpop.f32.mrb[39].mxu1  ;;  %3118 = vmatpush3.bf16.msra.mxu0 %v3467_v51 }
 0x143   :  { %v2894_v48 = vadd.f32 %v2893_v47, %v2892_v44 }
 0x144   :  { %v1319_v49 = vadd.f32 %v2830_v46, %v3988_v43  ;;  %v4040_v50 = vadd.f32 %v2891_v42, %v1316_v45  ;;  %v3468_v43 = vld [vmem:[%s4244_s5 + $0x28] sm:$0xff]  }
 0x145   :  { %3119 = vmatprep.subr.bf16.mxu0 %v3468_v43 }
 0x146   :  { %v2831_v53 = vpop.f32.mrb[40].mxu0  ;;  %v4045_v56 = vadd.f32 %v2894_v48, %v1319_v49  ;;  %3120 = vmatpush3.bf16.msra.mxu0 %v3468_v43 }
 0x147   :  { %v2832_v58 = vpop.f32.mrb[41].mxu0  ;;  %v2895_v59 = vpop.f32.mrb[40].mxu1 }
 0x148   :  { %v2833_v41 = vadd.f32 %v2832_v58, %v2831_v53  ;;  %v2834_v60 = vpop.f32.mrb[42].mxu0  ;;  %v2896_v61 = vpop.f32.mrb[41].mxu1 }
 0x149   :  { %v2835_v62 = vpop.f32.mrb[43].mxu0  ;;  %v2897_v63 = vadd.f32 %v2896_v61, %v2895_v59  ;;  %v2898_v0 = vpop.f32.mrb[42].mxu1 }
 0x14a   :  { %v1324_v1 = vadd.f32 %v2833_v41, %v3990_v55  ;;  %v2836_v2 = vadd.f32 %v2835_v62, %v2834_v60  ;;  %v2899_v3 = vpop.f32.mrb[43].mxu1 }
 0x14b   :  { %v2900_v6 = vadd.f32 %v2899_v3, %v2898_v0 }
 0x14c   :  { %v1327_v9 = vadd.f32 %v2836_v2, %v3992_v57  ;;  %v4052_v10 = vadd.f32 %v2897_v63, %v1324_v1 }
 0x14e   :  { %v2837_v11 = vpop.f32.mrb[44].mxu0  ;;  %v4054_v12 = vadd.f32 %v2900_v6, %v1327_v9 }
 0x14f   :  { %v2838_v13 = vpop.f32.mrb[45].mxu0  ;;  %v2901_v14 = vpop.f32.mrb[44].mxu1 }
 0x150   :  { %v2839_v15 = vadd.f32 %v2838_v13, %v2837_v11  ;;  %v2840_v16 = vpop.f32.mrb[46].mxu0  ;;  %v2902_v17 = vpop.f32.mrb[45].mxu1 }
 0x151   :  { %v2841_v18 = vpop.f32.mrb[47].mxu0  ;;  %v2903_v55 = vadd.f32 %v2902_v17, %v2901_v14  ;;  %v2904_v20 = vpop.f32.mrb[46].mxu1 }
 0x152   :  { %v1332_v23 = vadd.f32 %v2839_v15, %v3994_v5  ;;  %v2842_v24 = vadd.f32 %v2841_v18, %v2840_v16  ;;  %v2905_v25 = vpop.f32.mrb[47].mxu1 }
 0x153   :  { %v2906_v57 = vadd.f32 %v2905_v25, %v2904_v20 }
 0x154   :  { %v1335_v26 = vadd.f32 %v2842_v24, %v3996_v7  ;;  %v4058_v28 = vadd.f32 %v2903_v55, %v1332_v23 }
 0x156   :  { %v2843_v31 = vpop.f32.mrb[48].mxu0  ;;  %v4060_v32 = vadd.f32 %v2906_v57, %v1335_v26 }
 0x157   :  { %v2844_v34 = vpop.f32.mrb[49].mxu0  ;;  %v2907_v35 = vpop.f32.mrb[48].mxu1 }
 0x158   :  { %v2845_v27 = vadd.f32 %v2844_v34, %v2843_v31  ;;  %v2846_v37 = vpop.f32.mrb[50].mxu0  ;;  %v2908_v39 = vpop.f32.mrb[49].mxu1 }
 0x159   :  { %v2847_v29 = vpop.f32.mrb[51].mxu0  ;;  %v2909_v40 = vadd.f32 %v2908_v39, %v2907_v35  ;;  %v2910_v42 = vpop.f32.mrb[50].mxu1 }
 0x15a   :  { %v1340_v5 = vadd.f32 %v2845_v27, %v3998_v19  ;;  %v2848_v44 = vadd.f32 %v2847_v29, %v2846_v37  ;;  %v2911_v45 = vpop.f32.mrb[51].mxu1 }
 0x15b   :  { %v2912_v46 = vadd.f32 %v2911_v45, %v2910_v42 }
 0x15c   :  { %v1343_v7 = vadd.f32 %v2848_v44, %v4005_v22  ;;  %v4064_v47 = vadd.f32 %v2909_v40, %v1340_v5 }
 0x15e   :  { %v2849_v48 = vpop.f32.mrb[52].mxu0  ;;  %v4066_v49 = vadd.f32 %v2912_v46, %v1343_v7 }
 0x15f   :  { %v2850_v51 = vpop.f32.mrb[53].mxu0  ;;  %v2913_v53 = vpop.f32.mrb[52].mxu1 }
 0x160   :  { %v2851_v58 = vadd.f32 %v2850_v51, %v2849_v48  ;;  %v2852_v59 = vpop.f32.mrb[54].mxu0  ;;  %v2914_v41 = vpop.f32.mrb[53].mxu1 }
 0x161   :  { %v2853_v60 = vpop.f32.mrb[55].mxu0  ;;  %v2915_v61 = vadd.f32 %v2914_v41, %v2913_v53  ;;  %v2916_v43 = vpop.f32.mrb[54].mxu1 }
 0x162   :  { %v1348_v19 = vadd.f32 %v2851_v58, %v4008_v36  ;;  %v2854_v62 = vadd.f32 %v2853_v60, %v2852_v59  ;;  %v2917_v63 = vpop.f32.mrb[55].mxu1 }
 0x163   :  { %v2918_v0 = vadd.f32 %v2917_v63, %v2916_v43 }
 0x164   :  { %v1351_v22 = vadd.f32 %v2854_v62, %v4010_v38  ;;  %v1445_v1 = vadd.f32 %v2915_v61, %v1348_v19 }
 0x166   :  { %v2855_v2 = vpop.f32.mrb[56].mxu0  ;;  %v4070_v3 = vadd.f32 %v2918_v0, %v1351_v22 }
 0x167   :  { %v2856_v6 = vpop.f32.mrb[57].mxu0  ;;  %v2919_v9 = vpop.f32.mrb[56].mxu1 }
 0x168   :  { %v2857_v11 = vadd.f32 %v2856_v6, %v2855_v2  ;;  %v2858_v13 = vpop.f32.mrb[58].mxu0  ;;  %v2920_v14 = vpop.f32.mrb[57].mxu1 }
 0x169   :  { %v2859_v15 = vpop.f32.mrb[59].mxu0  ;;  %v2921_v16 = vadd.f32 %v2920_v14, %v2919_v9  ;;  %v2922_v17 = vpop.f32.mrb[58].mxu1 }
 0x16a   :  { %v1356_v18 = vadd.f32 %v2857_v11, %v4012_v52  ;;  %v2860_v36 = vadd.f32 %v2859_v15, %v2858_v13  ;;  %v2923_v55 = vpop.f32.mrb[59].mxu1 }
 0x16b   :  { %v2924_v20 = vadd.f32 %v2923_v55, %v2922_v17  ;;  %v4105_v55 = vld [vmem:[%s4243_s0 + $0x18] sm:$0xff]  }
 0x16c   :  { %v1359_v23 = vadd.f32 %v2860_v36, %v4014_v54  ;;  %v1453_v38 = vadd.f32 %v2921_v16, %v1356_v18  ;;  %v4098_v36 = vld [vmem:[%s4243_s0 + $0x10] sm:$0xff]  }
 0x16e   :  { %v2861_v24 = vpop.f32.mrb[60].mxu0  ;;  %v4074_v25 = vadd.f32 %v2924_v20, %v1359_v23  ;;  %v4110_v20 = vld [vmem:[%s4243_s0 + $0x20] sm:$0xff]   ;;  %v4117_v23 = vld [vmem:[%s4243_s0 + $0x28] sm:$0xff]  }
 0x16f   :  { %v2862_v57 = vpop.f32.mrb[61].mxu0  ;;  %v2925_v26 = vpop.f32.mrb[60].mxu1 }
 0x170   :  { %v2863_v31 = vadd.f32 %v2862_v57, %v2861_v24  ;;  %v2864_v34 = vpop.f32.mrb[62].mxu0  ;;  %v2926_v35 = vpop.f32.mrb[61].mxu1  ;;  %v4129_v24 = vld [vmem:[%s4243_s0 + $0x38] sm:$0xff]  }
 0x171   :  { %v2865_v27 = vpop.f32.mrb[63].mxu0  ;;  %v2927_v37 = vadd.f32 %v2926_v35, %v2925_v26  ;;  %v2928_v39 = vpop.f32.mrb[62].mxu1  ;;  %v3470_v57 = vld [vmem:[%s4244_s5 + $0x38] sm:$0xff]   ;;  %v2638_v26 = vld [vmem:[%s4245_s4] ss:$0 sm:$0xff] }
 0x172   :  { %v1364_v29 = vadd.f32 %v2863_v31, %v4016_v4  ;;  %v2866_v52 = vadd.f32 %v2865_v27, %v2864_v34  ;;  %v2929_v40 = vpop.f32.mrb[63].mxu1 }
 0x173   :  { %v2930_v42 = vadd.f32 %v2929_v40, %v2928_v39 }
 0x174   :  { %v1367_v5 = vadd.f32 %v2866_v52, %v4018_v8  ;;  %v1461_v54 = vadd.f32 %v2927_v37, %v1364_v29 }
 0x176   :  { %v3063_v44 = vpop.f32.mrb[64].mxu0  ;;  %v1464_v45 = vadd.f32 %v2930_v42, %v1367_v5 }
 0x177   :  { %v1510_v46 = vadd.f32 %v3063_v44, %v4040_v50  ;;  %v1501_v7 = vpop.f32.mrb[65].mxu0 }
 0x178   :  { %v1502_v48 = vadd.f32 %v1501_v7, %v4028_v30  ;;  %v3064_v51 = vpop.f32.mrb[66].mxu0 }
 0x179   :  { %v1513_v53 = vadd.f32 %v3064_v51, %v4045_v56  ;;  %v1504_v58 = vpop.f32.mrb[67].mxu0 }
 0x17a   :  { %v1505_v59 = vadd.f32 %v1504_v58, %v4033_v33 }
 0x17b   :  { %v1565_v4 = vpack.c.bf16 %v1513_v53, %v1510_v46 }
 0x17c   :  { %v1564_v41 = vpack.c.bf16 %v1505_v59, %v1502_v48 }
 0x17e   :  { %v3067_v60 = vpop.f32.mrb[68].mxu0  ;;  %3077 = vmatprep.subr.bf16.mxu1 %v1564_v41 }
 0x17f   :  { %v1526_v8 = vadd.f32 %v3067_v60, %v4058_v28  ;;  %v1517_v61 = vpop.f32.mrb[69].mxu0  ;;  %3078 = vmatpush3.bf16.msra.mxu1 %v1564_v41 }
 0x180   :  { %v1518_v43 = vadd.f32 %v1517_v61, %v4052_v10  ;;  %v3068_v50 = vpop.f32.mrb[70].mxu0  ;;  %3079 = vmatprep.subr.bf16.mxu1 %v1565_v4 }
 0x181   :  { %v1529_v30 = vadd.f32 %v3068_v50, %v4060_v32  ;;  %v1520_v19 = vpop.f32.mrb[71].mxu0 }
 0x182   :  { %v1521_v56 = vadd.f32 %v1520_v19, %v4054_v12 }
 0x183   :  { %v1567_v62 = vpack.c.bf16 %v1529_v30, %v1526_v8  ;;  %3080 = vmatpush3.bf16.msra.mxu1 %v1565_v4 }
 0x184   :  { %v1566_v33 = vpack.c.bf16 %v1521_v56, %v1518_v43 }
 0x186   :  { %v3071_v63 = vpop.f32.mrb[72].mxu0  ;;  %3081 = vmatprep.subr.bf16.mxu1 %v1566_v33 }
 0x187   :  { %v1542_v0 = vadd.f32 %v3071_v63, %v1445_v1  ;;  %v1533_v22 = vpop.f32.mrb[73].mxu0  ;;  %3082 = vmatpush3.bf16.msra.mxu1 %v1566_v33 }
 0x188   :  { %v1534_v28 = vadd.f32 %v1533_v22, %v4064_v47  ;;  %v3072_v2 = vpop.f32.mrb[74].mxu0  ;;  %3083 = vmatprep.subr.bf16.mxu1 %v1567_v62 }
 0x189   :  { %v1545_v10 = vadd.f32 %v3072_v2, %v4070_v3  ;;  %v1536_v6 = vpop.f32.mrb[75].mxu0 }
 0x18a   :  { %v1537_v32 = vadd.f32 %v1536_v6, %v4066_v49  ;;  %v4093_v49 = vld [vmem:[%s4243_s0 + $0x8] sm:$0xff]  }
 0x18b   :  { %v1569_v9 = vpack.c.bf16 %v1545_v10, %v1542_v0  ;;  %3084 = vmatpush3.bf16.msra.mxu1 %v1567_v62 }
 0x18c   :  { %v1568_v12 = vpack.c.bf16 %v1537_v32, %v1534_v28 }
 0x18e   :  { %v3075_v11 = vpop.f32.mrb[76].mxu0  ;;  %3085 = vmatprep.subr.bf16.mxu1 %v1568_v12 }
 0x18f   :  { %v1558_v13 = vadd.f32 %v3075_v11, %v1461_v54  ;;  %v1549_v14 = vpop.f32.mrb[77].mxu0  ;;  %3086 = vmatpush3.bf16.msra.mxu1 %v1568_v12 }
 0x190   :  { %v1550_v1 = vadd.f32 %v1549_v14, %v1453_v38  ;;  %v3076_v15 = vpop.f32.mrb[78].mxu0  ;;  %3087 = vmatprep.subr.bf16.mxu1 %v1569_v9  ;;  %v4122_v38 = vld [vmem:[%s4243_s0 + $0x30] sm:$0xff]  }
 0x191   :  { %v1561_v16 = vadd.f32 %v3076_v15, %v1464_v45  ;;  %v1552_v47 = vpop.f32.mrb[79].mxu0 }
 0x192   :  { %v1553_v17 = vadd.f32 %v1552_v47, %v4074_v25  ;;  %v3469_v25 = vld [vmem:[%s4244_s5 + $0x30] sm:$0xff]  }
 0x193   :  { %v1571_v18 = vpack.c.bf16 %v1561_v16, %v1558_v13  ;;  %3088 = vmatpush3.bf16.msra.mxu1 %v1569_v9  ;;  %3121 = vmatprep.subr.bf16.mxu0 %v3469_v25 }
 0x194   :  { %v1570_v3 = vpack.c.bf16 %v1553_v17, %v1550_v1  ;;  %3122 = vmatpush3.bf16.msra.mxu0 %v3469_v25 }
 0x195   :  { %3123 = vmatprep.subr.bf16.mxu0 %v3470_v57 }
 0x196   :  { %3089 = vmatprep.subr.bf16.mxu1 %v1570_v3 }
 0x197   :  { %3090 = vmatpush3.bf16.msra.mxu1 %v1570_v3 }
 0x198   :  { %3091 = vmatprep.subr.bf16.mxu1 %v1571_v18  ;;  %3124 = vmatpush3.bf16.msra.mxu0 %v3470_v57 }
 0x19b   :  { %3092 = vmatpush3.bf16.msra.mxu1 %v1571_v18 }
 0x19e   :  { %3094 = vmatmul.mubr.bf16.vlgmr.msra.gmra.mrb[64].mxu1 %v4093_v49 }
 0x19f   :  { %3097 = vmatprep.mubr.bf16.mxu1 %v4098_v36 }
 0x1a6   :  { %3098 = vmatmul.mubr.bf16.gmra.mrb[68].mxu1 %v4105_v55 }
 0x1a7   :  { %3101 = vmatprep.mubr.bf16.mxu1 %v4110_v20 }
 0x1ae   :  { %3102 = vmatmul.mubr.bf16.gmra.mrb[72].mxu1 %v4117_v23 }
 0x1af   :  { %3105 = vmatprep.mubr.bf16.mxu1 %v4122_v38 }
 0x1b6   :  { %3106 = vmatmul.mubr.bf16.gmra.mrb[76].mxu1 %v4129_v24 }
 0x1b7   :  { %3157 = vmatprep.mubr.bf16.mxu1 %v4003_v21 }
 0x271   :  { %v3095_v31 = vpop.f32.mrb[64].mxu1 }
 0x272   :  { %v1670_v34 = vadd.f32 %v3095_v31, %v2638_v26  ;;  %v1661_v35 = vpop.f32.mrb[65].mxu1 }
 0x273   :  { %v1662_v27 = vadd.f32 %v2638_v26, %v1661_v35  ;;  %v3096_v37 = vpop.f32.mrb[66].mxu1  ;;  %v3472_v35 = vld [vmem:[%s4246_s7 + $0x8] sm:$0xff]  }
 0x274   :  { %v1673_v39 = vadd.f32 %v3096_v37, %v2638_v26  ;;  %v1664_v29 = vpop.f32.mrb[67].mxu1  ;;  %v1726_v40 = vmax.f32 %v1670_v34, 0.0  ;;  %v3471_v34 = vld [vmem:[%s4246_s7] sm:$0xff]  }
 0x275   :  { %v1665_v52 = vadd.f32 %v2638_v26, %v1664_v29  ;;  %v1724_v5 = vmax.f32 %v1662_v27, 0.0  ;;  %3173 = vmatprep.subr.bf16.mxu0 %v3471_v34  ;;  %v3474_v27 = vld [vmem:[%s4246_s7 + $0x18] sm:$0xff]   ;;  %v3475_v37 = vld [vmem:[%s4246_s7 + $0x20] sm:$0xff]  }
 0x276   :  { %v1727_v42 = vmax.f32 %v1673_v39, 0.0  ;;  %v3476_v39 = vld [vmem:[%s4246_s7 + $0x28] sm:$0xff]  }
 0x277   :  { %v1725_v54 = vmax.f32 %v1665_v52, 0.0 }
 0x278   :  { %v1741_v44 = vpack.c.bf16 %v1727_v42, %v1726_v40 }
 0x279   :  { %v1740_v45 = vpack.c.bf16 %v1725_v54, %v1724_v5  ;;  %v3099_v46 = vpop.f32.mrb[68].mxu1 }
 0x27a   :  { %v1686_v7 = vadd.f32 %v3099_v46, %v2638_v26  ;;  %v1677_v48 = vpop.f32.mrb[69].mxu1 }
 0x27b   :  { %v1678_v51 = vadd.f32 %v2638_v26, %v1677_v48  ;;  %v3100_v53 = vpop.f32.mrb[70].mxu1  ;;  %3125 = vmatprep.mubr.bf16.mxu0 %v1740_v45 }
 0x27c   :  { %v1689_v58 = vadd.f32 %v3100_v53, %v2638_v26  ;;  %v1680_v59 = vpop.f32.mrb[71].mxu1  ;;  %3126 = vmatmul.mubr.bf16.vlgmr.msra.gmra.mrb[80].mxu0 %v1741_v44  ;;  %v1730_v41 = vmax.f32 %v1686_v7, 0.0 }
 0x27d   :  { %v1681_v4 = vadd.f32 %v2638_v26, %v1680_v59  ;;  %v1728_v8 = vmax.f32 %v1678_v51, 0.0  ;;  %3174 = vmatpush3.bf16.msra.mxu0 %v3471_v34 }
 0x27e   :  { %v1731_v60 = vmax.f32 %v1689_v58, 0.0  ;;  %3175 = vmatprep.subr.bf16.mxu0 %v3472_v35 }
 0x27f   :  { %v1729_v61 = vmax.f32 %v1681_v4, 0.0 }
 0x280   :  { %v1743_v43 = vpack.c.bf16 %v1731_v60, %v1730_v41 }
 0x281   :  { %v1742_v50 = vpack.c.bf16 %v1729_v61, %v1728_v8  ;;  %v3103_v30 = vpop.f32.mrb[72].mxu1  ;;  %3176 = vmatpush3.bf16.msra.mxu0 %v3472_v35 }
 0x282   :  { %v1702_v19 = vadd.f32 %v3103_v30, %v2638_v26  ;;  %v1693_v56 = vpop.f32.mrb[73].mxu1 }
 0x283   :  { %v1694_v62 = vadd.f32 %v2638_v26, %v1693_v56  ;;  %v3104_v33 = vpop.f32.mrb[74].mxu1  ;;  %3129 = vmatprep.mubr.bf16.mxu0 %v1742_v50  ;;  %v3477_v56 = vld [vmem:[%s4246_s7 + $0x30] sm:$0xff]  }
 0x284   :  { %v1705_v63 = vadd.f32 %v3104_v33, %v2638_v26  ;;  %v1696_v0 = vpop.f32.mrb[75].mxu1  ;;  %3130 = vmatmul.mubr.bf16.gmra.mrb[84].mxu0 %v1743_v43  ;;  %v1734_v28 = vmax.f32 %v1702_v19, 0.0  ;;  %v2655_v33 = vld [vmem:[%s4247_s6] ss:$0 sm:$0xff] }
 0x285   :  { %v1697_v22 = vadd.f32 %v2638_v26, %v1696_v0  ;;  %v1732_v10 = vmax.f32 %v1694_v62, 0.0  ;;  %v3478_v62 = vld [vmem:[%s4246_s7 + $0x38] sm:$0xff]  }
 0x286   :  { %v1735_v2 = vmax.f32 %v1705_v63, 0.0 }
 0x287   :  { %v1733_v6 = vmax.f32 %v1697_v22, 0.0 }
 0x288   :  { %v1745_v32 = vpack.c.bf16 %v1735_v2, %v1734_v28 }
 0x289   :  { %v1744_v9 = vpack.c.bf16 %v1733_v6, %v1732_v10  ;;  %v3107_v12 = vpop.f32.mrb[76].mxu1 }
 0x28a   :  { %v1718_v11 = vadd.f32 %v3107_v12, %v2638_v26  ;;  %v1709_v13 = vpop.f32.mrb[77].mxu1 }
 0x28b   :  { %v1710_v14 = vadd.f32 %v2638_v26, %v1709_v13  ;;  %v3108_v1 = vpop.f32.mrb[78].mxu1  ;;  %3133 = vmatprep.mubr.bf16.mxu0 %v1744_v9 }
 0x28c   :  { %v1721_v15 = vadd.f32 %v3108_v1, %v2638_v26  ;;  %v1712_v16 = vpop.f32.mrb[79].mxu1  ;;  %3134 = vmatmul.mubr.bf16.gmra.mrb[88].mxu0 %v1745_v32  ;;  %v1738_v17 = vmax.f32 %v1718_v11, 0.0 }
 0x28d   :  { %v1713_v47 = vadd.f32 %v2638_v26, %v1712_v16  ;;  %v1736_v3 = vmax.f32 %v1710_v14, 0.0  ;;  %v3473_v26 = vld [vmem:[%s4246_s7 + $0x10] sm:$0xff]  }
 0x28e   :  { %v1739_v18 = vmax.f32 %v1721_v15, 0.0  ;;  %3177 = vmatprep.subr.bf16.mxu0 %v3473_v26 }
 0x28f   :  { %v1737_v25 = vmax.f32 %v1713_v47, 0.0  ;;  %3178 = vmatpush3.bf16.msra.mxu0 %v3473_v26 }
 0x290   :  { %v1747_v57 = vpack.c.bf16 %v1739_v18, %v1738_v17  ;;  %3179 = vmatprep.subr.bf16.mxu0 %v3474_v27 }
 0x291   :  { %v1746_v31 = vpack.c.bf16 %v1737_v25, %v1736_v3 }
 0x293   :  { %3137 = vmatprep.mubr.bf16.mxu0 %v1746_v31  ;;  %3180 = vmatpush3.bf16.msra.mxu0 %v3474_v27 }
 0x294   :  { %3138 = vmatmul.mubr.bf16.gmra.mrb[92].mxu0 %v1747_v57  ;;  %3181 = vmatprep.subr.bf16.mxu0 %v3475_v37 }
 0x297   :  { %3182 = vmatpush3.bf16.msra.mxu0 %v3475_v37 }
 0x298   :  { %3183 = vmatprep.subr.bf16.mxu0 %v3476_v39 }
 0x29b   :  { %3184 = vmatpush3.bf16.msra.mxu0 %v3476_v39 }
 0x29c   :  { %3185 = vmatprep.subr.bf16.mxu0 %v3477_v56 }
 0x29f   :  { %3186 = vmatpush3.bf16.msra.mxu0 %v3477_v56 }
 0x2a0   :  { %3187 = vmatprep.subr.bf16.mxu0 %v3478_v62 }
 0x2a3   :  { %3188 = vmatpush3.bf16.msra.mxu0 %v3478_v62 }
 0x34f   :  { %v3127_v29 = vpop.f32.mrb[80].mxu0 }
 0x350   :  { %v1846_v52 = vpop.f32.mrb[81].mxu0 }
 0x351   :  { %v3128_v40 = vpop.f32.mrb[82].mxu0 }
 0x352   :  { %v1910_v42 = vpack.c.bf16 %v3128_v40, %v3127_v29  ;;  %v1849_v5 = vpop.f32.mrb[83].mxu0 }
 0x353   :  { %v1909_v54 = vpack.c.bf16 %v1849_v5, %v1846_v52 }
 0x355   :  { %3141 = vmatprep.subr.bf16.mxu1 %v1909_v54 }
 0x356   :  { %3142 = vmatpush3.bf16.msra.mxu1 %v1909_v54 }
 0x357   :  { %v3131_v44 = vpop.f32.mrb[84].mxu0  ;;  %3143 = vmatprep.subr.bf16.mxu1 %v1910_v42 }
 0x358   :  { %v1862_v45 = vpop.f32.mrb[85].mxu0 }
 0x359   :  { %v3132_v46 = vpop.f32.mrb[86].mxu0 }
 0x35a   :  { %v1912_v7 = vpack.c.bf16 %v3132_v46, %v3131_v44  ;;  %v1865_v48 = vpop.f32.mrb[87].mxu0  ;;  %3144 = vmatpush3.bf16.msra.mxu1 %v1910_v42 }
 0x35b   :  { %v1911_v51 = vpack.c.bf16 %v1865_v48, %v1862_v45 }
 0x35d   :  { %3145 = vmatprep.subr.bf16.mxu1 %v1911_v51 }
 0x35e   :  { %3146 = vmatpush3.bf16.msra.mxu1 %v1911_v51 }
 0x35f   :  { %v3135_v53 = vpop.f32.mrb[88].mxu0  ;;  %3147 = vmatprep.subr.bf16.mxu1 %v1912_v7 }
 0x360   :  { %v1878_v58 = vpop.f32.mrb[89].mxu0 }
 0x361   :  { %v3136_v59 = vpop.f32.mrb[90].mxu0 }
 0x362   :  { %v1914_v4 = vpack.c.bf16 %v3136_v59, %v3135_v53  ;;  %v1881_v41 = vpop.f32.mrb[91].mxu0  ;;  %3148 = vmatpush3.bf16.msra.mxu1 %v1912_v7 }
 0x363   :  { %v1913_v60 = vpack.c.bf16 %v1881_v41, %v1878_v58 }
 0x365   :  { %3149 = vmatprep.subr.bf16.mxu1 %v1913_v60 }
 0x366   :  { %3150 = vmatpush3.bf16.msra.mxu1 %v1913_v60 }
 0x367   :  { %v3139_v8 = vpop.f32.mrb[92].mxu0  ;;  %3151 = vmatprep.subr.bf16.mxu1 %v1914_v4 }
 0x368   :  { %v1894_v61 = vpop.f32.mrb[93].mxu0 }
 0x369   :  { %v3140_v43 = vpop.f32.mrb[94].mxu0 }
 0x36a   :  { %v1916_v50 = vpack.c.bf16 %v3140_v43, %v3139_v8  ;;  %v1897_v30 = vpop.f32.mrb[95].mxu0  ;;  %3152 = vmatpush3.bf16.msra.mxu1 %v1914_v4 }
 0x36b   :  { %v1915_v19 = vpack.c.bf16 %v1897_v30, %v1894_v61 }
 0x36d   :  { %3153 = vmatprep.subr.bf16.mxu1 %v1915_v19 }
 0x36e   :  { %3154 = vmatpush3.bf16.msra.mxu1 %v1915_v19 }
 0x36f   :  { %3155 = vmatprep.subr.bf16.mxu1 %v1916_v50 }
 0x372   :  { %3156 = vmatpush3.bf16.msra.mxu1 %v1916_v50 }
 0x375   :  { %3158 = vmatmul.mubr.bf16.vlgmr.msra.gmra.mrb[80].mxu1 %v4093_v49 }
 0x376   :  { %3161 = vmatprep.mubr.bf16.mxu1 %v4098_v36 }
 0x37d   :  { %3162 = vmatmul.mubr.bf16.gmra.mrb[84].mxu1 %v4105_v55 }
 0x37e   :  { %3165 = vmatprep.mubr.bf16.mxu1 %v4110_v20 }
 0x385   :  { %3166 = vmatmul.mubr.bf16.gmra.mrb[88].mxu1 %v4117_v23 }
 0x386   :  { %3169 = vmatprep.mubr.bf16.mxu1 %v4122_v38 }
 0x38d   :  { %3170 = vmatmul.mubr.bf16.gmra.mrb[92].mxu1 %v4129_v24 }
 0x38e   :  { %3221 = vmatprep.mubr.bf16.mxu1 %v4003_v21 }
 0x448   :  { %v3159_v63 = vpop.f32.mrb[80].mxu1 }
 0x449   :  { %v1967_v0 = vadd.f32 %v3159_v63, %v2655_v33  ;;  %v1958_v22 = vpop.f32.mrb[81].mxu1 }
 0x44a   :  { %v1959_v21 = vadd.f32 %v2655_v33, %v1958_v22  ;;  %v3160_v28 = vpop.f32.mrb[82].mxu1 }
 0x44b   :  { %v1970_v2 = vadd.f32 %v3160_v28, %v2655_v33  ;;  %v1961_v10 = vpop.f32.mrb[83].mxu1  ;;  %v2023_v32 = vmax.f32 %v1967_v0, 0.0 }
 0x44c   :  { %v1962_v6 = vadd.f32 %v2655_v33, %v1961_v10  ;;  %v2021_v12 = vmax.f32 %v1959_v21, 0.0 }
 0x44d   :  { %v2024_v9 = vmax.f32 %v1970_v2, 0.0 }
 0x44e   :  { %v2022_v11 = vmax.f32 %v1962_v6, 0.0 }
 0x44f   :  { %v2038_v13 = vpack.c.bf16 %v2024_v9, %v2023_v32 }
 0x450   :  { %v2037_v14 = vpack.c.bf16 %v2022_v11, %v2021_v12  ;;  %v3163_v1 = vpop.f32.mrb[84].mxu1 }
 0x451   :  { %v1983_v15 = vadd.f32 %v3163_v1, %v2655_v33  ;;  %v1974_v16 = vpop.f32.mrb[85].mxu1 }
 0x452   :  { %v1975_v47 = vadd.f32 %v2655_v33, %v1974_v16  ;;  %v3164_v17 = vpop.f32.mrb[86].mxu1  ;;  %3189 = vmatprep.mubr.bf16.mxu0 %v2037_v14 }
 0x453   :  { %v1986_v18 = vadd.f32 %v3164_v17, %v2655_v33  ;;  %v1977_v3 = vpop.f32.mrb[87].mxu1  ;;  %3190 = vmatmul.mubr.bf16.vlgmr.msra.gmra.mrb[96].mxu0 %v2038_v13  ;;  %v2027_v57 = vmax.f32 %v1983_v15, 0.0 }
 0x454   :  { %v1978_v25 = vadd.f32 %v2655_v33, %v1977_v3  ;;  %v2025_v34 = vmax.f32 %v1975_v47, 0.0 }
 0x455   :  { %v2028_v31 = vmax.f32 %v1986_v18, 0.0 }
 0x456   :  { %v2026_v35 = vmax.f32 %v1978_v25, 0.0 }
 0x457   :  { %v2040_v26 = vpack.c.bf16 %v2028_v31, %v2027_v57  ;;  %v3488_v31 = vmov 0.0  }
 0x458   :  { %v2039_v27 = vpack.c.bf16 %v2026_v35, %v2025_v34  ;;  %v3167_v37 = vpop.f32.mrb[88].mxu1  ;;  %3237 = vmatprep.subr.bf16.mxu0 %v3488_v31  ;;  %v2664_v35 = vld [vmem:[%s4250_s8] ss:$0 sm:$0xff] }
 0x459   :  { %v1999_v39 = vadd.f32 %v3167_v37, %v2655_v33  ;;  %v1990_v29 = vpop.f32.mrb[89].mxu1 }
 0x45a   :  { %v1991_v52 = vadd.f32 %v2655_v33, %v1990_v29  ;;  %v3168_v40 = vpop.f32.mrb[90].mxu1  ;;  %3193 = vmatprep.mubr.bf16.mxu0 %v2039_v27 }
 0x45b   :  { %v2002_v42 = vadd.f32 %v3168_v40, %v2655_v33  ;;  %v1993_v5 = vpop.f32.mrb[91].mxu1  ;;  %3194 = vmatmul.mubr.bf16.gmra.mrb[100].mxu0 %v2040_v26  ;;  %v2031_v44 = vmax.f32 %v1999_v39, 0.0 }
 0x45c   :  { %v1994_v54 = vadd.f32 %v2655_v33, %v1993_v5  ;;  %v2029_v46 = vmax.f32 %v1991_v52, 0.0 }
 0x45d   :  { %v2032_v45 = vmax.f32 %v2002_v42, 0.0 }
 0x45e   :  { %v2030_v7 = vmax.f32 %v1994_v54, 0.0 }
 0x45f   :  { %v2042_v48 = vpack.c.bf16 %v2032_v45, %v2031_v44 }
 0x460   :  { %v2041_v51 = vpack.c.bf16 %v2030_v7, %v2029_v46  ;;  %v3171_v53 = vpop.f32.mrb[92].mxu1 }
 0x461   :  { %v2015_v58 = vadd.f32 %v3171_v53, %v2655_v33  ;;  %v2006_v59 = vpop.f32.mrb[93].mxu1 }
 0x462   :  { %v2007_v4 = vadd.f32 %v2655_v33, %v2006_v59  ;;  %v3172_v41 = vpop.f32.mrb[94].mxu1  ;;  %3197 = vmatprep.mubr.bf16.mxu0 %v2041_v51 }
 0x463   :  { %v2018_v60 = vadd.f32 %v3172_v41, %v2655_v33  ;;  %v2009_v8 = vpop.f32.mrb[95].mxu1  ;;  %3198 = vmatmul.mubr.bf16.gmra.mrb[104].mxu0 %v2042_v48  ;;  %v2035_v43 = vmax.f32 %v2015_v58, 0.0 }
 0x464   :  { %v2010_v61 = vadd.f32 %v2655_v33, %v2009_v8  ;;  %v2033_v30 = vmax.f32 %v2007_v4, 0.0 }
 0x465   :  { %v2036_v50 = vmax.f32 %v2018_v60, 0.0 }
 0x466   :  { %v2034_v19 = vmax.f32 %v2010_v61, 0.0 }
 0x467   :  { %v2044_v56 = vpack.c.bf16 %v2036_v50, %v2035_v43 }
 0x468   :  { %v2043_v62 = vpack.c.bf16 %v2034_v19, %v2033_v30 }
 0x46a   :  { %3201 = vmatprep.mubr.bf16.mxu0 %v2043_v62 }
 0x46b   :  { %3202 = vmatmul.mubr.bf16.gmra.mrb[108].mxu0 %v2044_v56 }
 0x46c   :  { %3253 = vmatprep.mubr.msk.bf16.mxu0 %vm3489_vm0, %v3488_v31 }
 0x526   :  { %v3191_v63 = vpop.f32.mrb[96].mxu0 }
 0x527   :  { %v2143_v0 = vpop.f32.mrb[97].mxu0 }
 0x528   :  { %v3192_v22 = vpop.f32.mrb[98].mxu0 }
 0x529   :  { %v2207_v21 = vpack.c.bf16 %v3192_v22, %v3191_v63  ;;  %v2146_v28 = vpop.f32.mrb[99].mxu0 }
 0x52a   :  { %v2206_v2 = vpack.c.bf16 %v2146_v28, %v2143_v0 }
 0x52c   :  { %3205 = vmatprep.subr.bf16.mxu1 %v2206_v2 }
 0x52d   :  { %3206 = vmatpush3.bf16.msra.mxu1 %v2206_v2 }
 0x52e   :  { %v3195_v10 = vpop.f32.mrb[100].mxu0  ;;  %3207 = vmatprep.subr.bf16.mxu1 %v2207_v21 }
 0x52f   :  { %v2159_v6 = vpop.f32.mrb[101].mxu0 }
 0x530   :  { %v3196_v33 = vpop.f32.mrb[102].mxu0 }
 0x531   :  { %v2209_v32 = vpack.c.bf16 %v3196_v33, %v3195_v10  ;;  %v2162_v9 = vpop.f32.mrb[103].mxu0  ;;  %3208 = vmatpush3.bf16.msra.mxu1 %v2207_v21 }
 0x532   :  { %v2208_v12 = vpack.c.bf16 %v2162_v9, %v2159_v6  ;;  %v3487_v9 = vld [vmem:[%s4249_s9 + $0x38] sm:$0xff]  }
 0x534   :  { %3209 = vmatprep.subr.bf16.mxu1 %v2208_v12 }
 0x535   :  { %3210 = vmatpush3.bf16.msra.mxu1 %v2208_v12 }
 0x536   :  { %v3199_v11 = vpop.f32.mrb[104].mxu0  ;;  %3211 = vmatprep.subr.bf16.mxu1 %v2209_v32 }
 0x537   :  { %v2175_v13 = vpop.f32.mrb[105].mxu0 }
 0x538   :  { %v3200_v14 = vpop.f32.mrb[106].mxu0 }
 0x539   :  { %v2211_v1 = vpack.c.bf16 %v3200_v14, %v3199_v11  ;;  %v2178_v15 = vpop.f32.mrb[107].mxu0  ;;  %3212 = vmatpush3.bf16.msra.mxu1 %v2209_v32  ;;  %v3479_v32 = vld [vmem:[%s4248_s1] sm:$0xff]  }
 0x53a   :  { %v2210_v16 = vpack.c.bf16 %v2178_v15, %v2175_v13  ;;  %v2666_v15 = vld [vmem:[%s4251_s10] ss:$0 sm:$0xff] }
 0x53c   :  { %3213 = vmatprep.subr.bf16.mxu1 %v2210_v16 }
 0x53d   :  { %3214 = vmatpush3.bf16.msra.mxu1 %v2210_v16 }
 0x53e   :  { %v3203_v47 = vpop.f32.mrb[108].mxu0  ;;  %3215 = vmatprep.subr.bf16.mxu1 %v2211_v1 }
 0x53f   :  { %v2191_v17 = vpop.f32.mrb[109].mxu0 }
 0x540   :  { %v3204_v18 = vpop.f32.mrb[110].mxu0 }
 0x541   :  { %v2213_v3 = vpack.c.bf16 %v3204_v18, %v3203_v47  ;;  %v2194_v25 = vpop.f32.mrb[111].mxu0  ;;  %3216 = vmatpush3.bf16.msra.mxu1 %v2211_v1 }
 0x542   :  { %v2212_v57 = vpack.c.bf16 %v2194_v25, %v2191_v17 }
 0x544   :  { %3217 = vmatprep.subr.bf16.mxu1 %v2212_v57 }
 0x545   :  { %3218 = vmatpush3.bf16.msra.mxu1 %v2212_v57 }
 0x546   :  { %3219 = vmatprep.subr.bf16.mxu1 %v2213_v3 }
 0x549   :  { %3220 = vmatpush3.bf16.msra.mxu1 %v2213_v3 }
 0x54a   :  { %3257 = vmatprep.subr.bf16.mxu1 %v3488_v31 }
 0x54c   :  { %3222 = vmatmul.mubr.bf16.vlgmr.msra.gmra.mrb[96].mxu1 %v4093_v49  ;;  %v3480_v49 = vld [vmem:[%s4249_s9] sm:$0xff]  }
 0x54d   :  { %3225 = vmatprep.mubr.bf16.mxu1 %v4098_v36  ;;  %3258 = vmatpush3.bf16.msra.mxu1 %v3480_v49  ;;  %v3481_v36 = vld [vmem:[%s4249_s9 + $0x8] sm:$0xff]  }
 0x54e   :  { %3259 = vmatprep.subr.bf16.mxu1 %v3488_v31 }
 0x551   :  { %3260 = vmatpush3.bf16.msra.mxu1 %v3481_v36 }
 0x552   :  { %3261 = vmatprep.subr.bf16.mxu1 %v3488_v31 }
 0x554   :  { %3226 = vmatmul.mubr.bf16.gmra.mrb[100].mxu1 %v4105_v55  ;;  %v3482_v55 = vld [vmem:[%s4249_s9 + $0x10] sm:$0xff]  }
 0x555   :  { %3229 = vmatprep.mubr.bf16.mxu1 %v4110_v20  ;;  %3262 = vmatpush3.bf16.msra.mxu1 %v3482_v55  ;;  %v3483_v20 = vld [vmem:[%s4249_s9 + $0x18] sm:$0xff]  }
 0x556   :  { %3263 = vmatprep.subr.bf16.mxu1 %v3488_v31 }
 0x559   :  { %3264 = vmatpush3.bf16.msra.mxu1 %v3483_v20 }
 0x55a   :  { %3265 = vmatprep.subr.bf16.mxu1 %v3488_v31 }
 0x55c   :  { %3230 = vmatmul.mubr.bf16.gmra.mrb[104].mxu1 %v4117_v23  ;;  %v3484_v23 = vld [vmem:[%s4249_s9 + $0x20] sm:$0xff]  }
 0x55d   :  { %3233 = vmatprep.mubr.bf16.mxu1 %v4122_v38  ;;  %3266 = vmatpush3.bf16.msra.mxu1 %v3484_v23  ;;  %v3485_v38 = vld [vmem:[%s4249_s9 + $0x28] sm:$0xff]  }
 0x55e   :  { %3267 = vmatprep.subr.bf16.mxu1 %v3488_v31 }
 0x561   :  { %3268 = vmatpush3.bf16.msra.mxu1 %v3485_v38 }
 0x562   :  { %3269 = vmatprep.subr.bf16.mxu1 %v3488_v31 }
 0x564   :  { %3234 = vmatmul.mubr.bf16.gmra.mrb[108].mxu1 %v4129_v24  ;;  %v3486_v24 = vld [vmem:[%s4249_s9 + $0x30] sm:$0xff]  }
 0x565   :  { %3273 = vmatprep.mubr.msk.bf16.mxu1 %vm3489_vm0, %v3488_v31  ;;  %3270 = vmatpush3.bf16.msra.mxu1 %v3486_v24 }
 0x566   :  { %3271 = vmatprep.subr.bf16.mxu1 %v3488_v31 }
 0x569   :  { %3272 = vmatpush3.bf16.msra.mxu1 %v3487_v9 }
 0x61f   :  { %v3223_v34 = vpop.f32.mrb[96].mxu1 }
 0x620   :  { %v2255_v26 = vpop.f32.mrb[97].mxu1  ;;  %v2264_v37 = vadd.f32 %v3223_v34, %v2664_v35 }
 0x621   :  { %v3224_v27 = vpop.f32.mrb[98].mxu1  ;;  %v2256_v52 = vadd.f32 %v2664_v35, %v2255_v26 }
 0x622   :  { %v2267_v39 = vadd.f32 %v3224_v27, %v2664_v35  ;;  %v2258_v29 = vpop.f32.mrb[99].mxu1 }
 0x623   :  { %v2259_v40 = vadd.f32 %v2664_v35, %v2258_v29 }
 0x624   :  { %v2321_v42 = vpack.c.bf16 %v2267_v39, %v2264_v37 }
 0x625   :  { %v2320_v5 = vpack.c.bf16 %v2259_v40, %v2256_v52 }
 0x627   :  { %v3227_v54 = vpop.f32.mrb[100].mxu1  ;;  %3238 = vmatpush3.bf16.msra.mxu0 %v2320_v5 }
 0x628   :  { %v2271_v44 = vpop.f32.mrb[101].mxu1  ;;  %3239 = vmatprep.subr.bf16.mxu0 %v3488_v31  ;;  %v2280_v46 = vadd.f32 %v3227_v54, %v2664_v35 }
 0x629   :  { %v3228_v45 = vpop.f32.mrb[102].mxu1  ;;  %v2272_v51 = vadd.f32 %v2664_v35, %v2271_v44 }
 0x62a   :  { %v2283_v7 = vadd.f32 %v3228_v45, %v2664_v35  ;;  %v2274_v48 = vpop.f32.mrb[103].mxu1 }
 0x62b   :  { %v2275_v53 = vadd.f32 %v2664_v35, %v2274_v48  ;;  %3240 = vmatpush3.bf16.msra.mxu0 %v2321_v42 }
 0x62c   :  { %v2323_v58 = vpack.c.bf16 %v2283_v7, %v2280_v46  ;;  %3241 = vmatprep.subr.bf16.mxu0 %v3488_v31 }
 0x62d   :  { %v2322_v59 = vpack.c.bf16 %v2275_v53, %v2272_v51 }
 0x62f   :  { %v3231_v4 = vpop.f32.mrb[104].mxu1  ;;  %3242 = vmatpush3.bf16.msra.mxu0 %v2322_v59 }
 0x630   :  { %v2287_v41 = vpop.f32.mrb[105].mxu1  ;;  %3243 = vmatprep.subr.bf16.mxu0 %v3488_v31  ;;  %v2296_v8 = vadd.f32 %v3231_v4, %v2664_v35 }
 0x631   :  { %v3232_v60 = vpop.f32.mrb[106].mxu1  ;;  %v2288_v50 = vadd.f32 %v2664_v35, %v2287_v41 }
 0x632   :  { %v2299_v61 = vadd.f32 %v3232_v60, %v2664_v35  ;;  %v2290_v43 = vpop.f32.mrb[107].mxu1 }
 0x633   :  { %v2291_v30 = vadd.f32 %v2664_v35, %v2290_v43  ;;  %3244 = vmatpush3.bf16.msra.mxu0 %v2323_v58 }
 0x634   :  { %v2325_v19 = vpack.c.bf16 %v2299_v61, %v2296_v8  ;;  %3245 = vmatprep.subr.bf16.mxu0 %v3488_v31 }
 0x635   :  { %v2324_v56 = vpack.c.bf16 %v2291_v30, %v2288_v50 }
 0x637   :  { %v3235_v62 = vpop.f32.mrb[108].mxu1  ;;  %3246 = vmatpush3.bf16.msra.mxu0 %v2324_v56 }
 0x638   :  { %v2303_v63 = vpop.f32.mrb[109].mxu1  ;;  %3247 = vmatprep.subr.bf16.mxu0 %v3488_v31  ;;  %v2312_v22 = vadd.f32 %v3235_v62, %v2664_v35 }
 0x639   :  { %v3236_v0 = vpop.f32.mrb[110].mxu1  ;;  %v2304_v2 = vadd.f32 %v2664_v35, %v2303_v63 }
 0x63a   :  { %v2315_v21 = vadd.f32 %v3236_v0, %v2664_v35  ;;  %v2306_v28 = vpop.f32.mrb[111].mxu1 }
 0x63b   :  { %v2307_v10 = vadd.f32 %v2664_v35, %v2306_v28  ;;  %3248 = vmatpush3.bf16.msra.mxu0 %v2325_v19 }
 0x63c   :  { %v2327_v6 = vpack.c.bf16 %v2315_v21, %v2312_v22  ;;  %3249 = vmatprep.subr.bf16.mxu0 %v3488_v31 }
 0x63d   :  { %v2326_v33 = vpack.c.bf16 %v2307_v10, %v2304_v2 }
 0x63f   :  { %3250 = vmatpush3.bf16.msra.mxu0 %v2326_v33 }
 0x640   :  { %3251 = vmatprep.subr.bf16.mxu0 %v3488_v31 }
 0x643   :  { %3252 = vmatpush3.bf16.msra.mxu0 %v2327_v6 }
 0x646   :  { %3254 = vmatmul.mubr.bf16.vlgmr.msra.gmra.mrb[112].mxu0 %v3479_v32 }
 0x719   :  { %v2368_v12 = vpop.f32.mrb[112].mxu0 }
 0x71a   :  { %v3255_v11 = vpop.f32.mrb[113].mxu0 }
 0x71b   :  { %v2371_v13 = vpop.f32.mrb[114].mxu0 }
 0x71c   :  { %v2375_v14 = vpack.c.bf16 %v2371_v13, %v2368_v12  ;;  %v3256_v1 = vpop.f32.mrb[115].mxu0 }
 0x71e   :  { %3274 = vmatmul.mubr.bf16.vlgmr.msra.gmra.mrb[112].mxu1 %v2375_v14 }
 0x7f1   :  { %v2481_v16 = vpop.f32.mrb[112].mxu1 }
 0x7f2   :  { %v2482_v47 = vadd.f32 %v2666_v15, %v2481_v16  ;;  %v3275_v17 = vpop.f32.mrb[113].mxu1 }
 0x7f3   :  { %v2484_v18 = vpop.f32.mrb[114].mxu1 }
 0x7f4   :  { %2488 = vst [vmem:[%s4252_s11] sm:$0xff] %v2482_v47  ;;  %v2485_v3 = vadd.f32 %v2666_v15, %v2484_v18  ;;  %v3276_v25 = vpop.f32.mrb[115].mxu1 }
 0x7f6   :  { %2489 = vst [vmem:[%s4252_s11 + $0x8] sm:$0xff] %v2485_v3 }

</bundles_post_ra>
